<compile_context>
chip_gen: v7x
topology: tpu7x:2x2x1
jax: 0.10.0
libtpu: 0.0.40
codegen_flags: <defaults>
</compile_context>

<pallas_src>
import functools

import jax
import jax.numpy as jnp
from jax.experimental import pallas as pl
from jax.experimental.pallas import tpu as pltpu


def _conv3d_block_kernel(x_ref, w_ref, m_ref, gamma_ref, beta_ref, o_ref, *,
                         offs, mask_rows, off_max, l_out, dhw, eps, needs_valid):
    # x_ref     : (1, Cin, L_ext)   flat, halo-padded input for one batch element
    # w_ref     : (27, Cout, Cin)   per-tap conv weights (tap-major)
    # m_ref     : (8, L_out)        boundary masks (rows 0..5), row 6 = valid lane
    # gamma_ref : (Cout, 1), beta_ref : (Cout, 1)
    # o_ref     : (1, Cout, L_out)  lane-dense output
    xe = x_ref[0]                              # (Cin, L_ext), f32 or bf16
    masks_f32 = m_ref[...]                     # (8, L_out) f32
    masks = masks_f32.astype(xe.dtype)

    cout = o_ref.shape[1]
    acc = jnp.zeros((cout, l_out), jnp.float32)

    # In-kernel im2col: 27 statically lane-shifted views of the flat volume,
    # boundary-masked (== conv zero padding), each feeding a small MXU matmul
    # accumulated in f32.  The MXU is >90% idle on this mem-bound op, so the
    # small contraction (K=Cin) per tap costs nothing.
    for t in range(27):
        start = off_max + offs[t]
        tap = xe[:, start:start + l_out]       # (Cin, L_out) static lane slice
        m = None
        for r in mask_rows[t]:
            row = masks[r:r + 1, :]            # (1, L_out)
            m = row if m is None else m * row
        if m is not None:
            tap = tap * m
        acc = acc + jnp.dot(w_ref[t], tap,
                            preferred_element_type=jnp.float32)

    # InstanceNorm3d (affine=True): biased variance over the spatial axis,
    # PyTorch default eps.  Pad lanes hold exact zeros in `acc`, so the sum is
    # unaffected; they are masked out of the variance when present.
    inv_n = 1.0 / dhw
    mean = jnp.sum(acc, axis=-1, keepdims=True) * inv_n
    centered = acc - mean
    if needs_valid:
        cv = centered * masks_f32[6:7, :]      # exclude lane padding from stats
    else:
        cv = centered
    var = jnp.sum(cv * cv, axis=-1, keepdims=True) * inv_n
    scale = jax.lax.rsqrt(var + eps) * gamma_ref[...]   # gamma folded into scale
    y = centered * scale + beta_ref[...]

    # ReLU, single lane-dense (unmasked) store.
    o_ref[0] = jnp.maximum(y, 0.0).astype(o_ref.dtype)


def conv3d_block(x_ncdhw, weight, gamma, beta, eps=1e-5, use_bf16=True,
                 out_dtype=None):
    """Conv3dBlock forward.

    x_ncdhw: (N, Cin, D, H, W), weight: (Cout, Cin, 3, 3, 3),
    gamma/beta: (Cout,).  Returns (N, Cout, D, H, W).
    """
    N, Cin, D, H, W = x_ncdhw.shape
    Cout = weight.shape[0]
    DHW = D * H * W
    L_out = ((DHW + 127) // 128) * 128   # lane-dense output width
    OFF_MAX = H * W + W + 1              # largest |tap offset| for k=3, p=1
    L_ext = L_out + 2 * OFF_MAX

    cdt = jnp.bfloat16 if use_bf16 else jnp.float32
    out_dtype = x_ncdhw.dtype if out_dtype is None else out_dtype

    # Flat input with a zero halo of OFF_MAX lanes on each side (+ lane pad).
    # This replaces the 27x im2col HBM blow-up with ~(1 + small halo)x bytes.
    x_flat = x_ncdhw.reshape(N, Cin, DHW).astype(cdt)
    x_ext = jnp.pad(x_flat, ((0, 0), (0, 0), (OFF_MAX, OFF_MAX + (L_out - DHW))))

    # Weight (Cout, Cin, kd, kh, kw) -> (27, Cout, Cin), tap-major.
    w_taps = jnp.transpose(weight, (2, 3, 4, 0, 1)).reshape(27, Cout, Cin).astype(cdt)

    # Boundary masks: one 0/1 row per excluded boundary slab, plus a valid-lane
    # row; pad lanes (p >= DHW) are 0 in every row.
    idx = jnp.arange(DHW, dtype=jnp.int32)
    d_idx = idx // (H * W)
    h_idx = (idx // W) % H
    w_idx = idx % W
    rows = [d_idx != 0, d_idx != D - 1,
            h_idx != 0, h_idx != H - 1,
            w_idx != 0, w_idx != W - 1,
            jnp.ones((DHW,), jnp.bool_),   # row 6: valid (non-pad) lane
            jnp.zeros((DHW,), jnp.bool_)]  # row 7: unused (8-row sublane tile)
    masks = jnp.stack(rows).astype(jnp.float32)
    masks = jnp.pad(masks, ((0, 0), (0, L_out - DHW)))

    gamma2 = gamma.reshape(Cout, 1).astype(jnp.float32)
    beta2 = beta.reshape(Cout, 1).astype(jnp.float32)

    # Static per-tap lane offsets and which boundary-mask rows apply.
    offs, mask_rows = [], []
    for kd in range(3):
        for kh in range(3):
            for kw in range(3):
                offs.append((kd - 1) * H * W + (kh - 1) * W + (kw - 1))
                r = []
                if kd == 0:
                    r.append(0)
                elif kd == 2:
                    r.append(1)
                if kh == 0:
                    r.append(2)
                elif kh == 2:
                    r.append(3)
                if kw == 0:
                    r.append(4)
                elif kw == 2:
                    r.append(5)
                mask_rows.append(tuple(r))

    kernel = functools.partial(
        _conv3d_block_kernel, offs=tuple(offs), mask_rows=tuple(mask_rows),
        off_max=OFF_MAX, l_out=L_out, dhw=DHW, eps=eps,
        needs_valid=(L_out != DHW))

    in_itemsize = 2 if use_bf16 else 4
    out_itemsize = jnp.dtype(out_dtype).itemsize
    cost = pl.CostEstimate(
        flops=2 * N * Cout * 27 * Cin * DHW,
        transcendentals=N * Cout,
        bytes_accessed=(N * Cin * L_ext * in_itemsize
                        + 27 * Cout * Cin * in_itemsize
                        + 8 * L_out * 4 + 2 * Cout * 4
                        + N * Cout * L_out * out_itemsize))

    # TODO(synk): production 64^3 volumes need a DHW-tile grid axis (halo'd
    # tap slices per tile) with a two-pass / streaming InstanceNorm
    # (accumulate per-(n,c) sum & sumsq across tiles, normalize in a second
    # pass) so the working set fits v7x's 64 MiB VMEM; unnecessary at these
    # toy sizes.
    # TODO(synk): on single-TensorCore v5e/v6e, fold the batch into the lane
    # dim (one grid step) to amortize the ~0.35us/step grid overhead; kept as
    # grid=(N,) "parallel" here so v7x's two TCs each take a batch element.
    out = pl.pallas_call(
        kernel,
        out_shape=jax.ShapeDtypeStruct((N, Cout, L_out), out_dtype),
        grid_spec=pltpu.PrefetchScalarGridSpec(
            num_scalar_prefetch=0,
            grid=(N,),
            in_specs=[
                pl.BlockSpec((1, Cin, L_ext), lambda n: (n, 0, 0)),
                pl.BlockSpec((27, Cout, Cin), lambda n: (0, 0, 0)),
                pl.BlockSpec((8, L_out), lambda n: (0, 0)),
                pl.BlockSpec((Cout, 1), lambda n: (0, 0)),
                pl.BlockSpec((Cout, 1), lambda n: (0, 0)),
            ],
            out_specs=pl.BlockSpec((1, Cout, L_out), lambda n: (n, 0, 0)),
        ),
        compiler_params=pltpu.CompilerParams(
            dimension_semantics=("parallel",)),
        cost_estimate=cost,
    )(x_ext, w_taps, masks, gamma2, beta2)

    # Drop lane padding (no-op when DHW is already a multiple of 128); the
    # NC(DHW) -> NCDHW reshape is contiguous and free.
    return out[:, :, :DHW].reshape(N, Cout, D, H, W)


def _reference(x_ncdhw, weight, gamma, beta, eps=1e-5):
    conv = jax.lax.conv_general_dilated(
        x_ncdhw, weight, window_strides=(1, 1, 1),
        padding=[(1, 1), (1, 1), (1, 1)],
        dimension_numbers=('NCDHW', 'OIDHW', 'NCDHW'))
    mean = conv.mean(axis=(2, 3, 4), keepdims=True)
    var = ((conv - mean) ** 2).mean(axis=(2, 3, 4), keepdims=True)
    xn = (conv - mean) / jnp.sqrt(var + eps)
    y = xn * gamma[None, :, None, None, None] + beta[None, :, None, None, None]
    return jnp.maximum(y, 0.0)


if __name__ == "__main__":
    key = jax.random.PRNGKey(0)
    k_x, k_w, k_g, k_b = jax.random.split(key, 4)

    N, Cin, Cout, D, H, W = 2, 4, 8, 8, 8, 8

    x = jax.random.normal(k_x, (N, Cin, D, H, W), dtype=jnp.float32)
    weight = jax.random.normal(k_w, (Cout, Cin, 3, 3, 3), dtype=jnp.float32) * 0.1
    gamma = 1.0 + 0.1 * jax.random.normal(k_g, (Cout,), dtype=jnp.float32)
    beta = 0.1 * jax.random.normal(k_b, (Cout,), dtype=jnp.float32)

    ref = _reference(x, weight, gamma, beta)

    # f32 operand path: tight-tolerance correctness check.
    out_f32 = jax.block_until_ready(
        conv3d_block(x, weight, gamma, beta, use_bf16=False))
    assert out_f32.shape == (N, Cout, D, H, W)
    err_f32 = float(jnp.max(jnp.abs(out_f32 - ref)))
    assert jnp.allclose(out_f32, ref, atol=1e-4, rtol=1e-4), err_f32

    # bf16 operand path (default): f32 accumulation + f32 InstanceNorm, so only
    # the matmul operands are low precision -> looser tolerance expected.
    out_bf16 = jax.block_until_ready(
        conv3d_block(x, weight, gamma, beta, use_bf16=True))
    err_bf16 = float(jnp.max(jnp.abs(out_bf16 - ref)))
    assert jnp.allclose(out_bf16, ref, atol=5e-2, rtol=5e-2), err_bf16

    print("KERNEL_OK")
</pallas_src>

<mosaic_0001>
module attributes {stable_mosaic.version = 11 : i64} {
  func.func @_conv3d_block_kernel(%arg0: i32, %arg1: memref<1x4x658xf32, #tpu.memory_space<vmem>>, %arg2: memref<27x8x4xf32, #tpu.memory_space<vmem>>, %arg3: memref<8x512xf32, #tpu.memory_space<vmem>>, %arg4: memref<8x1xf32, #tpu.memory_space<vmem>>, %arg5: memref<8x1xf32, #tpu.memory_space<vmem>>, %arg6: memref<1x8x512xf32, #tpu.memory_space<vmem>>) attributes {dimension_semantics = [#tpu.dimension_semantics<parallel>], iteration_bounds = array<i64: 2>, scalar_prefetch = 0 : i64, scratch_operands = 0 : i64, tpu.core_type = #tpu.core_type<tc>, window_params = [{transform_indices = @transform_0, window_bounds = array<i64: 1, 4, 658>}, {pipeline_mode = #tpu.pipeline_mode<synchronous>, transform_indices = @transform_1, window_bounds = array<i64: 27, 8, 4>}, {pipeline_mode = #tpu.pipeline_mode<synchronous>, transform_indices = @transform_2, window_bounds = array<i64: 8, 512>}, {pipeline_mode = #tpu.pipeline_mode<synchronous>, transform_indices = @transform_3, window_bounds = array<i64: 8, 1>}, {pipeline_mode = #tpu.pipeline_mode<synchronous>, transform_indices = @transform_4, window_bounds = array<i64: 8, 1>}, {transform_indices = @transform_5, window_bounds = array<i64: 1, 8, 512>}]} {
    %c0 = arith.constant 0 : index
    %c0_0 = arith.constant 0 : index
    %c0_1 = arith.constant 0 : index
    %0 = vector.load %arg1[%c0, %c0_0, %c0_1] : memref<1x4x658xf32, #tpu.memory_space<vmem>>, vector<1x4x658xf32>
    %1 = vector.shape_cast %0 : vector<1x4x658xf32> to vector<4x658xf32>
    %c0_2 = arith.constant 0 : index
    %c0_3 = arith.constant 0 : index
    %2 = vector.load %arg3[%c0_2, %c0_3] : memref<8x512xf32, #tpu.memory_space<vmem>>, vector<8x512xf32>
    %cst = arith.constant 0.000000e+00 : f32
    %3 = vector.broadcast %cst : f32 to vector<8x512xf32>
    %4 = vector.extract_strided_slice %1 {offsets = [0, 0], sizes = [4, 512], strides = [1, 1]} : vector<4x658xf32> to vector<4x512xf32>
    %5 = vector.extract_strided_slice %2 {offsets = [0, 0], sizes = [1, 512], strides = [1, 1]} : vector<8x512xf32> to vector<1x512xf32>
    %6 = vector.extract_strided_slice %2 {offsets = [2, 0], sizes = [1, 512], strides = [1, 1]} : vector<8x512xf32> to vector<1x512xf32>
    %7 = arith.mulf %5, %6 : vector<1x512xf32>
    %8 = vector.extract_strided_slice %2 {offsets = [4, 0], sizes = [1, 512], strides = [1, 1]} : vector<8x512xf32> to vector<1x512xf32>
    %9 = arith.mulf %7, %8 : vector<1x512xf32>
    %10 = vector.broadcast %9 : vector<1x512xf32> to vector<4x512xf32>
    %11 = arith.mulf %4, %10 : vector<4x512xf32>
    %c0_4 = arith.constant 0 : index
    %c0_5 = arith.constant 0 : index
    %c0_6 = arith.constant 0 : index
    %12 = vector.load %arg2[%c0_4, %c0_5, %c0_6] : memref<27x8x4xf32, #tpu.memory_space<vmem>>, vector<1x8x4xf32>
    %13 = vector.shape_cast %12 : vector<1x8x4xf32> to vector<8x4xf32>
    %cst_7 = arith.constant dense<0.000000e+00> : vector<8x512xf32>
    %14 = tpu.matmul %13, %11, %cst_7 {dimension_numbers = #tpu.dot_dimension_numbers<[1], [0], [0], [1], [0, 0, 1, 1], [], []>} : vector<8x4xf32>, vector<4x512xf32>, vector<8x512xf32> -> vector<8x512xf32>
    %15 = arith.addf %3, %14 : vector<8x512xf32>
    %16 = vector.extract_strided_slice %1 {offsets = [0, 1], sizes = [4, 512], strides = [1, 1]} : vector<4x658xf32> to vector<4x512xf32>
    %17 = vector.extract_strided_slice %2 {offsets = [0, 0], sizes = [1, 512], strides = [1, 1]} : vector<8x512xf32> to vector<1x512xf32>
    %18 = vector.extract_strided_slice %2 {offsets = [2, 0], sizes = [1, 512], strides = [1, 1]} : vector<8x512xf32> to vector<1x512xf32>
    %19 = arith.mulf %17, %18 : vector<1x512xf32>
    %20 = vector.broadcast %19 : vector<1x512xf32> to vector<4x512xf32>
    %21 = arith.mulf %16, %20 : vector<4x512xf32>
    %c1 = arith.constant 1 : index
    %c0_8 = arith.constant 0 : index
    %c0_9 = arith.constant 0 : index
    %22 = vector.load %arg2[%c1, %c0_8, %c0_9] : memref<27x8x4xf32, #tpu.memory_space<vmem>>, vector<1x8x4xf32>
    %23 = vector.shape_cast %22 : vector<1x8x4xf32> to vector<8x4xf32>
    %cst_10 = arith.constant dense<0.000000e+00> : vector<8x512xf32>
    %24 = tpu.matmul %23, %21, %cst_10 {dimension_numbers = #tpu.dot_dimension_numbers<[1], [0], [0], [1], [0, 0, 1, 1], [], []>} : vector<8x4xf32>, vector<4x512xf32>, vector<8x512xf32> -> vector<8x512xf32>
    %25 = arith.addf %15, %24 : vector<8x512xf32>
    %26 = vector.extract_strided_slice %1 {offsets = [0, 2], sizes = [4, 512], strides = [1, 1]} : vector<4x658xf32> to vector<4x512xf32>
    %27 = vector.extract_strided_slice %2 {offsets = [0, 0], sizes = [1, 512], strides = [1, 1]} : vector<8x512xf32> to vector<1x512xf32>
    %28 = vector.extract_strided_slice %2 {offsets = [2, 0], sizes = [1, 512], strides = [1, 1]} : vector<8x512xf32> to vector<1x512xf32>
    %29 = arith.mulf %27, %28 : vector<1x512xf32>
    %30 = vector.extract_strided_slice %2 {offsets = [5, 0], sizes = [1, 512], strides = [1, 1]} : vector<8x512xf32> to vector<1x512xf32>
    %31 = arith.mulf %29, %30 : vector<1x512xf32>
    %32 = vector.broadcast %31 : vector<1x512xf32> to vector<4x512xf32>
    %33 = arith.mulf %26, %32 : vector<4x512xf32>
    %c2 = arith.constant 2 : index
    %c0_11 = arith.constant 0 : index
    %c0_12 = arith.constant 0 : index
    %34 = vector.load %arg2[%c2, %c0_11, %c0_12] : memref<27x8x4xf32, #tpu.memory_space<vmem>>, vector<1x8x4xf32>
    %35 = vector.shape_cast %34 : vector<1x8x4xf32> to vector<8x4xf32>
    %cst_13 = arith.constant dense<0.000000e+00> : vector<8x512xf32>
    %36 = tpu.matmul %35, %33, %cst_13 {dimension_numbers = #tpu.dot_dimension_numbers<[1], [0], [0], [1], [0, 0, 1, 1], [], []>} : vector<8x4xf32>, vector<4x512xf32>, vector<8x512xf32> -> vector<8x512xf32>
    %37 = arith.addf %25, %36 : vector<8x512xf32>
    %38 = vector.extract_strided_slice %1 {offsets = [0, 8], sizes = [4, 512], strides = [1, 1]} : vector<4x658xf32> to vector<4x512xf32>
    %39 = vector.extract_strided_slice %2 {offsets = [0, 0], sizes = [1, 512], strides = [1, 1]} : vector<8x512xf32> to vector<1x512xf32>
    %40 = vector.extract_strided_slice %2 {offsets = [4, 0], sizes = [1, 512], strides = [1, 1]} : vector<8x512xf32> to vector<1x512xf32>
    %41 = arith.mulf %39, %40 : vector<1x512xf32>
    %42 = vector.broadcast %41 : vector<1x512xf32> to vector<4x512xf32>
    %43 = arith.mulf %38, %42 : vector<4x512xf32>
    %c3 = arith.constant 3 : index
    %c0_14 = arith.constant 0 : index
    %c0_15 = arith.constant 0 : index
    %44 = vector.load %arg2[%c3, %c0_14, %c0_15] : memref<27x8x4xf32, #tpu.memory_space<vmem>>, vector<1x8x4xf32>
    %45 = vector.shape_cast %44 : vector<1x8x4xf32> to vector<8x4xf32>
    %cst_16 = arith.constant dense<0.000000e+00> : vector<8x512xf32>
    %46 = tpu.matmul %45, %43, %cst_16 {dimension_numbers = #tpu.dot_dimension_numbers<[1], [0], [0], [1], [0, 0, 1, 1], [], []>} : vector<8x4xf32>, vector<4x512xf32>, vector<8x512xf32> -> vector<8x512xf32>
    %47 = arith.addf %37, %46 : vector<8x512xf32>
    %48 = vector.extract_strided_slice %1 {offsets = [0, 9], sizes = [4, 512], strides = [1, 1]} : vector<4x658xf32> to vector<4x512xf32>
    %49 = vector.extract_strided_slice %2 {offsets = [0, 0], sizes = [1, 512], strides = [1, 1]} : vector<8x512xf32> to vector<1x512xf32>
    %50 = vector.broadcast %49 : vector<1x512xf32> to vector<4x512xf32>
    %51 = arith.mulf %48, %50 : vector<4x512xf32>
    %c4 = arith.constant 4 : index
    %c0_17 = arith.constant 0 : index
    %c0_18 = arith.constant 0 : index
    %52 = vector.load %arg2[%c4, %c0_17, %c0_18] : memref<27x8x4xf32, #tpu.memory_space<vmem>>, vector<1x8x4xf32>
    %53 = vector.shape_cast %52 : vector<1x8x4xf32> to vector<8x4xf32>
    %cst_19 = arith.constant dense<0.000000e+00> : vector<8x512xf32>
    %54 = tpu.matmul %53, %51, %cst_19 {dimension_numbers = #tpu.dot_dimension_numbers<[1], [0], [0], [1], [0, 0, 1, 1], [], []>} : vector<8x4xf32>, vector<4x512xf32>, vector<8x512xf32> -> vector<8x512xf32>
    %55 = arith.addf %47, %54 : vector<8x512xf32>
    %56 = vector.extract_strided_slice %1 {offsets = [0, 10], sizes = [4, 512], strides = [1, 1]} : vector<4x658xf32> to vector<4x512xf32>
    %57 = vector.extract_strided_slice %2 {offsets = [0, 0], sizes = [1, 512], strides = [1, 1]} : vector<8x512xf32> to vector<1x512xf32>
    %58 = vector.extract_strided_slice %2 {offsets = [5, 0], sizes = [1, 512], strides = [1, 1]} : vector<8x512xf32> to vector<1x512xf32>
    %59 = arith.mulf %57, %58 : vector<1x512xf32>
    %60 = vector.broadcast %59 : vector<1x512xf32> to vector<4x512xf32>
    %61 = arith.mulf %56, %60 : vector<4x512xf32>
    %c5 = arith.constant 5 : index
    %c0_20 = arith.constant 0 : index
    %c0_21 = arith.constant 0 : index
    %62 = vector.load %arg2[%c5, %c0_20, %c0_21] : memref<27x8x4xf32, #tpu.memory_space<vmem>>, vector<1x8x4xf32>
    %63 = vector.shape_cast %62 : vector<1x8x4xf32> to vector<8x4xf32>
    %cst_22 = arith.constant dense<0.000000e+00> : vector<8x512xf32>
    %64 = tpu.matmul %63, %61, %cst_22 {dimension_numbers = #tpu.dot_dimension_numbers<[1], [0], [0], [1], [0, 0, 1, 1], [], []>} : vector<8x4xf32>, vector<4x512xf32>, vector<8x512xf32> -> vector<8x512xf32>
    %65 = arith.addf %55, %64 : vector<8x512xf32>
    %66 = vector.extract_strided_slice %1 {offsets = [0, 16], sizes = [4, 512], strides = [1, 1]} : vector<4x658xf32> to vector<4x512xf32>
    %67 = vector.extract_strided_slice %2 {offsets = [0, 0], sizes = [1, 512], strides = [1, 1]} : vector<8x512xf32> to vector<1x512xf32>
    %68 = vector.extract_strided_slice %2 {offsets = [3, 0], sizes = [1, 512], strides = [1, 1]} : vector<8x512xf32> to vector<1x512xf32>
    %69 = arith.mulf %67, %68 : vector<1x512xf32>
    %70 = vector.extract_strided_slice %2 {offsets = [4, 0], sizes = [1, 512], strides = [1, 1]} : vector<8x512xf32> to vector<1x512xf32>
    %71 = arith.mulf %69, %70 : vector<1x512xf32>
    %72 = vector.broadcast %71 : vector<1x512xf32> to vector<4x512xf32>
    %73 = arith.mulf %66, %72 : vector<4x512xf32>
    %c6 = arith.constant 6 : index
    %c0_23 = arith.constant 0 : index
    %c0_24 = arith.constant 0 : index
    %74 = vector.load %arg2[%c6, %c0_23, %c0_24] : memref<27x8x4xf32, #tpu.memory_space<vmem>>, vector<1x8x4xf32>
    %75 = vector.shape_cast %74 : vector<1x8x4xf32> to vector<8x4xf32>
    %cst_25 = arith.constant dense<0.000000e+00> : vector<8x512xf32>
    %76 = tpu.matmul %75, %73, %cst_25 {dimension_numbers = #tpu.dot_dimension_numbers<[1], [0], [0], [1], [0, 0, 1, 1], [], []>} : vector<8x4xf32>, vector<4x512xf32>, vector<8x512xf32> -> vector<8x512xf32>
    %77 = arith.addf %65, %76 : vector<8x512xf32>
    %78 = vector.extract_strided_slice %1 {offsets = [0, 17], sizes = [4, 512], strides = [1, 1]} : vector<4x658xf32> to vector<4x512xf32>
    %79 = vector.extract_strided_slice %2 {offsets = [0, 0], sizes = [1, 512], strides = [1, 1]} : vector<8x512xf32> to vector<1x512xf32>
    %80 = vector.extract_strided_slice %2 {offsets = [3, 0], sizes = [1, 512], strides = [1, 1]} : vector<8x512xf32> to vector<1x512xf32>
    %81 = arith.mulf %79, %80 : vector<1x512xf32>
    %82 = vector.broadcast %81 : vector<1x512xf32> to vector<4x512xf32>
    %83 = arith.mulf %78, %82 : vector<4x512xf32>
    %c7 = arith.constant 7 : index
    %c0_26 = arith.constant 0 : index
    %c0_27 = arith.constant 0 : index
    %84 = vector.load %arg2[%c7, %c0_26, %c0_27] : memref<27x8x4xf32, #tpu.memory_space<vmem>>, vector<1x8x4xf32>
    %85 = vector.shape_cast %84 : vector<1x8x4xf32> to vector<8x4xf32>
    %cst_28 = arith.constant dense<0.000000e+00> : vector<8x512xf32>
    %86 = tpu.matmul %85, %83, %cst_28 {dimension_numbers = #tpu.dot_dimension_numbers<[1], [0], [0], [1], [0, 0, 1, 1], [], []>} : vector<8x4xf32>, vector<4x512xf32>, vector<8x512xf32> -> vector<8x512xf32>
    %87 = arith.addf %77, %86 : vector<8x512xf32>
    %88 = vector.extract_strided_slice %1 {offsets = [0, 18], sizes = [4, 512], strides = [1, 1]} : vector<4x658xf32> to vector<4x512xf32>
    %89 = vector.extract_strided_slice %2 {offsets = [0, 0], sizes = [1, 512], strides = [1, 1]} : vector<8x512xf32> to vector<1x512xf32>
    %90 = vector.extract_strided_slice %2 {offsets = [3, 0], sizes = [1, 512], strides = [1, 1]} : vector<8x512xf32> to vector<1x512xf32>
    %91 = arith.mulf %89, %90 : vector<1x512xf32>
    %92 = vector.extract_strided_slice %2 {offsets = [5, 0], sizes = [1, 512], strides = [1, 1]} : vector<8x512xf32> to vector<1x512xf32>
    %93 = arith.mulf %91, %92 : vector<1x512xf32>
    %94 = vector.broadcast %93 : vector<1x512xf32> to vector<4x512xf32>
    %95 = arith.mulf %88, %94 : vector<4x512xf32>
    %c8 = arith.constant 8 : index
    %c0_29 = arith.constant 0 : index
    %c0_30 = arith.constant 0 : index
    %96 = vector.load %arg2[%c8, %c0_29, %c0_30] : memref<27x8x4xf32, #tpu.memory_space<vmem>>, vector<1x8x4xf32>
    %97 = vector.shape_cast %96 : vector<1x8x4xf32> to vector<8x4xf32>
    %cst_31 = arith.constant dense<0.000000e+00> : vector<8x512xf32>
    %98 = tpu.matmul %97, %95, %cst_31 {dimension_numbers = #tpu.dot_dimension_numbers<[1], [0], [0], [1], [0, 0, 1, 1], [], []>} : vector<8x4xf32>, vector<4x512xf32>, vector<8x512xf32> -> vector<8x512xf32>
    %99 = arith.addf %87, %98 : vector<8x512xf32>
    %100 = vector.extract_strided_slice %1 {offsets = [0, 64], sizes = [4, 512], strides = [1, 1]} : vector<4x658xf32> to vector<4x512xf32>
    %101 = vector.extract_strided_slice %2 {offsets = [2, 0], sizes = [1, 512], strides = [1, 1]} : vector<8x512xf32> to vector<1x512xf32>
    %102 = vector.extract_strided_slice %2 {offsets = [4, 0], sizes = [1, 512], strides = [1, 1]} : vector<8x512xf32> to vector<1x512xf32>
    %103 = arith.mulf %101, %102 : vector<1x512xf32>
    %104 = vector.broadcast %103 : vector<1x512xf32> to vector<4x512xf32>
    %105 = arith.mulf %100, %104 : vector<4x512xf32>
    %c9 = arith.constant 9 : index
    %c0_32 = arith.constant 0 : index
    %c0_33 = arith.constant 0 : index
    %106 = vector.load %arg2[%c9, %c0_32, %c0_33] : memref<27x8x4xf32, #tpu.memory_space<vmem>>, vector<1x8x4xf32>
    %107 = vector.shape_cast %106 : vector<1x8x4xf32> to vector<8x4xf32>
    %cst_34 = arith.constant dense<0.000000e+00> : vector<8x512xf32>
    %108 = tpu.matmul %107, %105, %cst_34 {dimension_numbers = #tpu.dot_dimension_numbers<[1], [0], [0], [1], [0, 0, 1, 1], [], []>} : vector<8x4xf32>, vector<4x512xf32>, vector<8x512xf32> -> vector<8x512xf32>
    %109 = arith.addf %99, %108 : vector<8x512xf32>
    %110 = vector.extract_strided_slice %1 {offsets = [0, 65], sizes = [4, 512], strides = [1, 1]} : vector<4x658xf32> to vector<4x512xf32>
    %111 = vector.extract_strided_slice %2 {offsets = [2, 0], sizes = [1, 512], strides = [1, 1]} : vector<8x512xf32> to vector<1x512xf32>
    %112 = vector.broadcast %111 : vector<1x512xf32> to vector<4x512xf32>
    %113 = arith.mulf %110, %112 : vector<4x512xf32>
    %c10 = arith.constant 10 : index
    %c0_35 = arith.constant 0 : index
    %c0_36 = arith.constant 0 : index
    %114 = vector.load %arg2[%c10, %c0_35, %c0_36] : memref<27x8x4xf32, #tpu.memory_space<vmem>>, vector<1x8x4xf32>
    %115 = vector.shape_cast %114 : vector<1x8x4xf32> to vector<8x4xf32>
    %cst_37 = arith.constant dense<0.000000e+00> : vector<8x512xf32>
    %116 = tpu.matmul %115, %113, %cst_37 {dimension_numbers = #tpu.dot_dimension_numbers<[1], [0], [0], [1], [0, 0, 1, 1], [], []>} : vector<8x4xf32>, vector<4x512xf32>, vector<8x512xf32> -> vector<8x512xf32>
    %117 = arith.addf %109, %116 : vector<8x512xf32>
    %118 = vector.extract_strided_slice %1 {offsets = [0, 66], sizes = [4, 512], strides = [1, 1]} : vector<4x658xf32> to vector<4x512xf32>
    %119 = vector.extract_strided_slice %2 {offsets = [2, 0], sizes = [1, 512], strides = [1, 1]} : vector<8x512xf32> to vector<1x512xf32>
    %120 = vector.extract_strided_slice %2 {offsets = [5, 0], sizes = [1, 512], strides = [1, 1]} : vector<8x512xf32> to vector<1x512xf32>
    %121 = arith.mulf %119, %120 : vector<1x512xf32>
    %122 = vector.broadcast %121 : vector<1x512xf32> to vector<4x512xf32>
    %123 = arith.mulf %118, %122 : vector<4x512xf32>
    %c11 = arith.constant 11 : index
    %c0_38 = arith.constant 0 : index
    %c0_39 = arith.constant 0 : index
    %124 = vector.load %arg2[%c11, %c0_38, %c0_39] : memref<27x8x4xf32, #tpu.memory_space<vmem>>, vector<1x8x4xf32>
    %125 = vector.shape_cast %124 : vector<1x8x4xf32> to vector<8x4xf32>
    %cst_40 = arith.constant dense<0.000000e+00> : vector<8x512xf32>
    %126 = tpu.matmul %125, %123, %cst_40 {dimension_numbers = #tpu.dot_dimension_numbers<[1], [0], [0], [1], [0, 0, 1, 1], [], []>} : vector<8x4xf32>, vector<4x512xf32>, vector<8x512xf32> -> vector<8x512xf32>
    %127 = arith.addf %117, %126 : vector<8x512xf32>
    %128 = vector.extract_strided_slice %1 {offsets = [0, 72], sizes = [4, 512], strides = [1, 1]} : vector<4x658xf32> to vector<4x512xf32>
    %129 = vector.extract_strided_slice %2 {offsets = [4, 0], sizes = [1, 512], strides = [1, 1]} : vector<8x512xf32> to vector<1x512xf32>
    %130 = vector.broadcast %129 : vector<1x512xf32> to vector<4x512xf32>
    %131 = arith.mulf %128, %130 : vector<4x512xf32>
    %c12 = arith.constant 12 : index
    %c0_41 = arith.constant 0 : index
    %c0_42 = arith.constant 0 : index
    %132 = vector.load %arg2[%c12, %c0_41, %c0_42] : memref<27x8x4xf32, #tpu.memory_space<vmem>>, vector<1x8x4xf32>
    %133 = vector.shape_cast %132 : vector<1x8x4xf32> to vector<8x4xf32>
    %cst_43 = arith.constant dense<0.000000e+00> : vector<8x512xf32>
    %134 = tpu.matmul %133, %131, %cst_43 {dimension_numbers = #tpu.dot_dimension_numbers<[1], [0], [0], [1], [0, 0, 1, 1], [], []>} : vector<8x4xf32>, vector<4x512xf32>, vector<8x512xf32> -> vector<8x512xf32>
    %135 = arith.addf %127, %134 : vector<8x512xf32>
    %136 = vector.extract_strided_slice %1 {offsets = [0, 73], sizes = [4, 512], strides = [1, 1]} : vector<4x658xf32> to vector<4x512xf32>
    %c13 = arith.constant 13 : index
    %c0_44 = arith.constant 0 : index
    %c0_45 = arith.constant 0 : index
    %137 = vector.load %arg2[%c13, %c0_44, %c0_45] : memref<27x8x4xf32, #tpu.memory_space<vmem>>, vector<1x8x4xf32>
    %138 = vector.shape_cast %137 : vector<1x8x4xf32> to vector<8x4xf32>
    %cst_46 = arith.constant dense<0.000000e+00> : vector<8x512xf32>
    %139 = tpu.matmul %138, %136, %cst_46 {dimension_numbers = #tpu.dot_dimension_numbers<[1], [0], [0], [1], [0, 0, 1, 1], [], []>} : vector<8x4xf32>, vector<4x512xf32>, vector<8x512xf32> -> vector<8x512xf32>
    %140 = arith.addf %135, %139 : vector<8x512xf32>
    %141 = vector.extract_strided_slice %1 {offsets = [0, 74], sizes = [4, 512], strides = [1, 1]} : vector<4x658xf32> to vector<4x512xf32>
    %142 = vector.extract_strided_slice %2 {offsets = [5, 0], sizes = [1, 512], strides = [1, 1]} : vector<8x512xf32> to vector<1x512xf32>
    %143 = vector.broadcast %142 : vector<1x512xf32> to vector<4x512xf32>
    %144 = arith.mulf %141, %143 : vector<4x512xf32>
    %c14 = arith.constant 14 : index
    %c0_47 = arith.constant 0 : index
    %c0_48 = arith.constant 0 : index
    %145 = vector.load %arg2[%c14, %c0_47, %c0_48] : memref<27x8x4xf32, #tpu.memory_space<vmem>>, vector<1x8x4xf32>
    %146 = vector.shape_cast %145 : vector<1x8x4xf32> to vector<8x4xf32>
    %cst_49 = arith.constant dense<0.000000e+00> : vector<8x512xf32>
    %147 = tpu.matmul %146, %144, %cst_49 {dimension_numbers = #tpu.dot_dimension_numbers<[1], [0], [0], [1], [0, 0, 1, 1], [], []>} : vector<8x4xf32>, vector<4x512xf32>, vector<8x512xf32> -> vector<8x512xf32>
    %148 = arith.addf %140, %147 : vector<8x512xf32>
    %149 = vector.extract_strided_slice %1 {offsets = [0, 80], sizes = [4, 512], strides = [1, 1]} : vector<4x658xf32> to vector<4x512xf32>
    %150 = vector.extract_strided_slice %2 {offsets = [3, 0], sizes = [1, 512], strides = [1, 1]} : vector<8x512xf32> to vector<1x512xf32>
    %151 = vector.extract_strided_slice %2 {offsets = [4, 0], sizes = [1, 512], strides = [1, 1]} : vector<8x512xf32> to vector<1x512xf32>
    %152 = arith.mulf %150, %151 : vector<1x512xf32>
    %153 = vector.broadcast %152 : vector<1x512xf32> to vector<4x512xf32>
    %154 = arith.mulf %149, %153 : vector<4x512xf32>
    %c15 = arith.constant 15 : index
    %c0_50 = arith.constant 0 : index
    %c0_51 = arith.constant 0 : index
    %155 = vector.load %arg2[%c15, %c0_50, %c0_51] : memref<27x8x4xf32, #tpu.memory_space<vmem>>, vector<1x8x4xf32>
    %156 = vector.shape_cast %155 : vector<1x8x4xf32> to vector<8x4xf32>
    %cst_52 = arith.constant dense<0.000000e+00> : vector<8x512xf32>
    %157 = tpu.matmul %156, %154, %cst_52 {dimension_numbers = #tpu.dot_dimension_numbers<[1], [0], [0], [1], [0, 0, 1, 1], [], []>} : vector<8x4xf32>, vector<4x512xf32>, vector<8x512xf32> -> vector<8x512xf32>
    %158 = arith.addf %148, %157 : vector<8x512xf32>
    %159 = vector.extract_strided_slice %1 {offsets = [0, 81], sizes = [4, 512], strides = [1, 1]} : vector<4x658xf32> to vector<4x512xf32>
    %160 = vector.extract_strided_slice %2 {offsets = [3, 0], sizes = [1, 512], strides = [1, 1]} : vector<8x512xf32> to vector<1x512xf32>
    %161 = vector.broadcast %160 : vector<1x512xf32> to vector<4x512xf32>
    %162 = arith.mulf %159, %161 : vector<4x512xf32>
    %c16 = arith.constant 16 : index
    %c0_53 = arith.constant 0 : index
    %c0_54 = arith.constant 0 : index
    %163 = vector.load %arg2[%c16, %c0_53, %c0_54] : memref<27x8x4xf32, #tpu.memory_space<vmem>>, vector<1x8x4xf32>
    %164 = vector.shape_cast %163 : vector<1x8x4xf32> to vector<8x4xf32>
    %cst_55 = arith.constant dense<0.000000e+00> : vector<8x512xf32>
    %165 = tpu.matmul %164, %162, %cst_55 {dimension_numbers = #tpu.dot_dimension_numbers<[1], [0], [0], [1], [0, 0, 1, 1], [], []>} : vector<8x4xf32>, vector<4x512xf32>, vector<8x512xf32> -> vector<8x512xf32>
    %166 = arith.addf %158, %165 : vector<8x512xf32>
    %167 = vector.extract_strided_slice %1 {offsets = [0, 82], sizes = [4, 512], strides = [1, 1]} : vector<4x658xf32> to vector<4x512xf32>
    %168 = vector.extract_strided_slice %2 {offsets = [3, 0], sizes = [1, 512], strides = [1, 1]} : vector<8x512xf32> to vector<1x512xf32>
    %169 = vector.extract_strided_slice %2 {offsets = [5, 0], sizes = [1, 512], strides = [1, 1]} : vector<8x512xf32> to vector<1x512xf32>
    %170 = arith.mulf %168, %169 : vector<1x512xf32>
    %171 = vector.broadcast %170 : vector<1x512xf32> to vector<4x512xf32>
    %172 = arith.mulf %167, %171 : vector<4x512xf32>
    %c17 = arith.constant 17 : index
    %c0_56 = arith.constant 0 : index
    %c0_57 = arith.constant 0 : index
    %173 = vector.load %arg2[%c17, %c0_56, %c0_57] : memref<27x8x4xf32, #tpu.memory_space<vmem>>, vector<1x8x4xf32>
    %174 = vector.shape_cast %173 : vector<1x8x4xf32> to vector<8x4xf32>
    %cst_58 = arith.constant dense<0.000000e+00> : vector<8x512xf32>
    %175 = tpu.matmul %174, %172, %cst_58 {dimension_numbers = #tpu.dot_dimension_numbers<[1], [0], [0], [1], [0, 0, 1, 1], [], []>} : vector<8x4xf32>, vector<4x512xf32>, vector<8x512xf32> -> vector<8x512xf32>
    %176 = arith.addf %166, %175 : vector<8x512xf32>
    %177 = vector.extract_strided_slice %1 {offsets = [0, 128], sizes = [4, 512], strides = [1, 1]} : vector<4x658xf32> to vector<4x512xf32>
    %178 = vector.extract_strided_slice %2 {offsets = [1, 0], sizes = [1, 512], strides = [1, 1]} : vector<8x512xf32> to vector<1x512xf32>
    %179 = vector.extract_strided_slice %2 {offsets = [2, 0], sizes = [1, 512], strides = [1, 1]} : vector<8x512xf32> to vector<1x512xf32>
    %180 = arith.mulf %178, %179 : vector<1x512xf32>
    %181 = vector.extract_strided_slice %2 {offsets = [4, 0], sizes = [1, 512], strides = [1, 1]} : vector<8x512xf32> to vector<1x512xf32>
    %182 = arith.mulf %180, %181 : vector<1x512xf32>
    %183 = vector.broadcast %182 : vector<1x512xf32> to vector<4x512xf32>
    %184 = arith.mulf %177, %183 : vector<4x512xf32>
    %c18 = arith.constant 18 : index
    %c0_59 = arith.constant 0 : index
    %c0_60 = arith.constant 0 : index
    %185 = vector.load %arg2[%c18, %c0_59, %c0_60] : memref<27x8x4xf32, #tpu.memory_space<vmem>>, vector<1x8x4xf32>
    %186 = vector.shape_cast %185 : vector<1x8x4xf32> to vector<8x4xf32>
    %cst_61 = arith.constant dense<0.000000e+00> : vector<8x512xf32>
    %187 = tpu.matmul %186, %184, %cst_61 {dimension_numbers = #tpu.dot_dimension_numbers<[1], [0], [0], [1], [0, 0, 1, 1], [], []>} : vector<8x4xf32>, vector<4x512xf32>, vector<8x512xf32> -> vector<8x512xf32>
    %188 = arith.addf %176, %187 : vector<8x512xf32>
    %189 = vector.extract_strided_slice %1 {offsets = [0, 129], sizes = [4, 512], strides = [1, 1]} : vector<4x658xf32> to vector<4x512xf32>
    %190 = vector.extract_strided_slice %2 {offsets = [1, 0], sizes = [1, 512], strides = [1, 1]} : vector<8x512xf32> to vector<1x512xf32>
    %191 = vector.extract_strided_slice %2 {offsets = [2, 0], sizes = [1, 512], strides = [1, 1]} : vector<8x512xf32> to vector<1x512xf32>
    %192 = arith.mulf %190, %191 : vector<1x512xf32>
    %193 = vector.broadcast %192 : vector<1x512xf32> to vector<4x512xf32>
    %194 = arith.mulf %189, %193 : vector<4x512xf32>
    %c19 = arith.constant 19 : index
    %c0_62 = arith.constant 0 : index
    %c0_63 = arith.constant 0 : index
    %195 = vector.load %arg2[%c19, %c0_62, %c0_63] : memref<27x8x4xf32, #tpu.memory_space<vmem>>, vector<1x8x4xf32>
    %196 = vector.shape_cast %195 : vector<1x8x4xf32> to vector<8x4xf32>
    %cst_64 = arith.constant dense<0.000000e+00> : vector<8x512xf32>
    %197 = tpu.matmul %196, %194, %cst_64 {dimension_numbers = #tpu.dot_dimension_numbers<[1], [0], [0], [1], [0, 0, 1, 1], [], []>} : vector<8x4xf32>, vector<4x512xf32>, vector<8x512xf32> -> vector<8x512xf32>
    %198 = arith.addf %188, %197 : vector<8x512xf32>
    %199 = vector.extract_strided_slice %1 {offsets = [0, 130], sizes = [4, 512], strides = [1, 1]} : vector<4x658xf32> to vector<4x512xf32>
    %200 = vector.extract_strided_slice %2 {offsets = [1, 0], sizes = [1, 512], strides = [1, 1]} : vector<8x512xf32> to vector<1x512xf32>
    %201 = vector.extract_strided_slice %2 {offsets = [2, 0], sizes = [1, 512], strides = [1, 1]} : vector<8x512xf32> to vector<1x512xf32>
    %202 = arith.mulf %200, %201 : vector<1x512xf32>
    %203 = vector.extract_strided_slice %2 {offsets = [5, 0], sizes = [1, 512], strides = [1, 1]} : vector<8x512xf32> to vector<1x512xf32>
    %204 = arith.mulf %202, %203 : vector<1x512xf32>
    %205 = vector.broadcast %204 : vector<1x512xf32> to vector<4x512xf32>
    %206 = arith.mulf %199, %205 : vector<4x512xf32>
    %c20 = arith.constant 20 : index
    %c0_65 = arith.constant 0 : index
    %c0_66 = arith.constant 0 : index
    %207 = vector.load %arg2[%c20, %c0_65, %c0_66] : memref<27x8x4xf32, #tpu.memory_space<vmem>>, vector<1x8x4xf32>
    %208 = vector.shape_cast %207 : vector<1x8x4xf32> to vector<8x4xf32>
    %cst_67 = arith.constant dense<0.000000e+00> : vector<8x512xf32>
    %209 = tpu.matmul %208, %206, %cst_67 {dimension_numbers = #tpu.dot_dimension_numbers<[1], [0], [0], [1], [0, 0, 1, 1], [], []>} : vector<8x4xf32>, vector<4x512xf32>, vector<8x512xf32> -> vector<8x512xf32>
    %210 = arith.addf %198, %209 : vector<8x512xf32>
    %211 = vector.extract_strided_slice %1 {offsets = [0, 136], sizes = [4, 512], strides = [1, 1]} : vector<4x658xf32> to vector<4x512xf32>
    %212 = vector.extract_strided_slice %2 {offsets = [1, 0], sizes = [1, 512], strides = [1, 1]} : vector<8x512xf32> to vector<1x512xf32>
    %213 = vector.extract_strided_slice %2 {offsets = [4, 0], sizes = [1, 512], strides = [1, 1]} : vector<8x512xf32> to vector<1x512xf32>
    %214 = arith.mulf %212, %213 : vector<1x512xf32>
    %215 = vector.broadcast %214 : vector<1x512xf32> to vector<4x512xf32>
    %216 = arith.mulf %211, %215 : vector<4x512xf32>
    %c21 = arith.constant 21 : index
    %c0_68 = arith.constant 0 : index
    %c0_69 = arith.constant 0 : index
    %217 = vector.load %arg2[%c21, %c0_68, %c0_69] : memref<27x8x4xf32, #tpu.memory_space<vmem>>, vector<1x8x4xf32>
    %218 = vector.shape_cast %217 : vector<1x8x4xf32> to vector<8x4xf32>
    %cst_70 = arith.constant dense<0.000000e+00> : vector<8x512xf32>
    %219 = tpu.matmul %218, %216, %cst_70 {dimension_numbers = #tpu.dot_dimension_numbers<[1], [0], [0], [1], [0, 0, 1, 1], [], []>} : vector<8x4xf32>, vector<4x512xf32>, vector<8x512xf32> -> vector<8x512xf32>
    %220 = arith.addf %210, %219 : vector<8x512xf32>
    %221 = vector.extract_strided_slice %1 {offsets = [0, 137], sizes = [4, 512], strides = [1, 1]} : vector<4x658xf32> to vector<4x512xf32>
    %222 = vector.extract_strided_slice %2 {offsets = [1, 0], sizes = [1, 512], strides = [1, 1]} : vector<8x512xf32> to vector<1x512xf32>
    %223 = vector.broadcast %222 : vector<1x512xf32> to vector<4x512xf32>
    %224 = arith.mulf %221, %223 : vector<4x512xf32>
    %c22 = arith.constant 22 : index
    %c0_71 = arith.constant 0 : index
    %c0_72 = arith.constant 0 : index
    %225 = vector.load %arg2[%c22, %c0_71, %c0_72] : memref<27x8x4xf32, #tpu.memory_space<vmem>>, vector<1x8x4xf32>
    %226 = vector.shape_cast %225 : vector<1x8x4xf32> to vector<8x4xf32>
    %cst_73 = arith.constant dense<0.000000e+00> : vector<8x512xf32>
    %227 = tpu.matmul %226, %224, %cst_73 {dimension_numbers = #tpu.dot_dimension_numbers<[1], [0], [0], [1], [0, 0, 1, 1], [], []>} : vector<8x4xf32>, vector<4x512xf32>, vector<8x512xf32> -> vector<8x512xf32>
    %228 = arith.addf %220, %227 : vector<8x512xf32>
    %229 = vector.extract_strided_slice %1 {offsets = [0, 138], sizes = [4, 512], strides = [1, 1]} : vector<4x658xf32> to vector<4x512xf32>
    %230 = vector.extract_strided_slice %2 {offsets = [1, 0], sizes = [1, 512], strides = [1, 1]} : vector<8x512xf32> to vector<1x512xf32>
    %231 = vector.extract_strided_slice %2 {offsets = [5, 0], sizes = [1, 512], strides = [1, 1]} : vector<8x512xf32> to vector<1x512xf32>
    %232 = arith.mulf %230, %231 : vector<1x512xf32>
    %233 = vector.broadcast %232 : vector<1x512xf32> to vector<4x512xf32>
    %234 = arith.mulf %229, %233 : vector<4x512xf32>
    %c23 = arith.constant 23 : index
    %c0_74 = arith.constant 0 : index
    %c0_75 = arith.constant 0 : index
    %235 = vector.load %arg2[%c23, %c0_74, %c0_75] : memref<27x8x4xf32, #tpu.memory_space<vmem>>, vector<1x8x4xf32>
    %236 = vector.shape_cast %235 : vector<1x8x4xf32> to vector<8x4xf32>
    %cst_76 = arith.constant dense<0.000000e+00> : vector<8x512xf32>
    %237 = tpu.matmul %236, %234, %cst_76 {dimension_numbers = #tpu.dot_dimension_numbers<[1], [0], [0], [1], [0, 0, 1, 1], [], []>} : vector<8x4xf32>, vector<4x512xf32>, vector<8x512xf32> -> vector<8x512xf32>
    %238 = arith.addf %228, %237 : vector<8x512xf32>
    %239 = vector.extract_strided_slice %1 {offsets = [0, 144], sizes = [4, 512], strides = [1, 1]} : vector<4x658xf32> to vector<4x512xf32>
    %240 = vector.extract_strided_slice %2 {offsets = [1, 0], sizes = [1, 512], strides = [1, 1]} : vector<8x512xf32> to vector<1x512xf32>
    %241 = vector.extract_strided_slice %2 {offsets = [3, 0], sizes = [1, 512], strides = [1, 1]} : vector<8x512xf32> to vector<1x512xf32>
    %242 = arith.mulf %240, %241 : vector<1x512xf32>
    %243 = vector.extract_strided_slice %2 {offsets = [4, 0], sizes = [1, 512], strides = [1, 1]} : vector<8x512xf32> to vector<1x512xf32>
    %244 = arith.mulf %242, %243 : vector<1x512xf32>
    %245 = vector.broadcast %244 : vector<1x512xf32> to vector<4x512xf32>
    %246 = arith.mulf %239, %245 : vector<4x512xf32>
    %c24 = arith.constant 24 : index
    %c0_77 = arith.constant 0 : index
    %c0_78 = arith.constant 0 : index
    %247 = vector.load %arg2[%c24, %c0_77, %c0_78] : memref<27x8x4xf32, #tpu.memory_space<vmem>>, vector<1x8x4xf32>
    %248 = vector.shape_cast %247 : vector<1x8x4xf32> to vector<8x4xf32>
    %cst_79 = arith.constant dense<0.000000e+00> : vector<8x512xf32>
    %249 = tpu.matmul %248, %246, %cst_79 {dimension_numbers = #tpu.dot_dimension_numbers<[1], [0], [0], [1], [0, 0, 1, 1], [], []>} : vector<8x4xf32>, vector<4x512xf32>, vector<8x512xf32> -> vector<8x512xf32>
    %250 = arith.addf %238, %249 : vector<8x512xf32>
    %251 = vector.extract_strided_slice %1 {offsets = [0, 145], sizes = [4, 512], strides = [1, 1]} : vector<4x658xf32> to vector<4x512xf32>
    %252 = vector.extract_strided_slice %2 {offsets = [1, 0], sizes = [1, 512], strides = [1, 1]} : vector<8x512xf32> to vector<1x512xf32>
    %253 = vector.extract_strided_slice %2 {offsets = [3, 0], sizes = [1, 512], strides = [1, 1]} : vector<8x512xf32> to vector<1x512xf32>
    %254 = arith.mulf %252, %253 : vector<1x512xf32>
    %255 = vector.broadcast %254 : vector<1x512xf32> to vector<4x512xf32>
    %256 = arith.mulf %251, %255 : vector<4x512xf32>
    %c25 = arith.constant 25 : index
    %c0_80 = arith.constant 0 : index
    %c0_81 = arith.constant 0 : index
    %257 = vector.load %arg2[%c25, %c0_80, %c0_81] : memref<27x8x4xf32, #tpu.memory_space<vmem>>, vector<1x8x4xf32>
    %258 = vector.shape_cast %257 : vector<1x8x4xf32> to vector<8x4xf32>
    %cst_82 = arith.constant dense<0.000000e+00> : vector<8x512xf32>
    %259 = tpu.matmul %258, %256, %cst_82 {dimension_numbers = #tpu.dot_dimension_numbers<[1], [0], [0], [1], [0, 0, 1, 1], [], []>} : vector<8x4xf32>, vector<4x512xf32>, vector<8x512xf32> -> vector<8x512xf32>
    %260 = arith.addf %250, %259 : vector<8x512xf32>
    %261 = vector.extract_strided_slice %1 {offsets = [0, 146], sizes = [4, 512], strides = [1, 1]} : vector<4x658xf32> to vector<4x512xf32>
    %262 = vector.extract_strided_slice %2 {offsets = [1, 0], sizes = [1, 512], strides = [1, 1]} : vector<8x512xf32> to vector<1x512xf32>
    %263 = vector.extract_strided_slice %2 {offsets = [3, 0], sizes = [1, 512], strides = [1, 1]} : vector<8x512xf32> to vector<1x512xf32>
    %264 = arith.mulf %262, %263 : vector<1x512xf32>
    %265 = vector.extract_strided_slice %2 {offsets = [5, 0], sizes = [1, 512], strides = [1, 1]} : vector<8x512xf32> to vector<1x512xf32>
    %266 = arith.mulf %264, %265 : vector<1x512xf32>
    %267 = vector.broadcast %266 : vector<1x512xf32> to vector<4x512xf32>
    %268 = arith.mulf %261, %267 : vector<4x512xf32>
    %c26 = arith.constant 26 : index
    %c0_83 = arith.constant 0 : index
    %c0_84 = arith.constant 0 : index
    %269 = vector.load %arg2[%c26, %c0_83, %c0_84] : memref<27x8x4xf32, #tpu.memory_space<vmem>>, vector<1x8x4xf32>
    %270 = vector.shape_cast %269 : vector<1x8x4xf32> to vector<8x4xf32>
    %cst_85 = arith.constant dense<0.000000e+00> : vector<8x512xf32>
    %271 = tpu.matmul %270, %268, %cst_85 {dimension_numbers = #tpu.dot_dimension_numbers<[1], [0], [0], [1], [0, 0, 1, 1], [], []>} : vector<8x4xf32>, vector<4x512xf32>, vector<8x512xf32> -> vector<8x512xf32>
    %272 = arith.addf %260, %271 : vector<8x512xf32>
    %cst_86 = arith.constant dense<0.000000e+00> : vector<8xf32>
    %273 = vector.multi_reduction <add>, %272, %cst_86 [1] : vector<8x512xf32> to vector<8xf32>
    %274 = vector.shape_cast %273 : vector<8xf32> to vector<8x1xf32>
    %cst_87 = arith.constant 0.001953125 : f32
    %275 = vector.broadcast %cst_87 : f32 to vector<8x1xf32>
    %276 = arith.mulf %274, %275 : vector<8x1xf32>
    %277 = vector.broadcast %276 : vector<8x1xf32> to vector<8x512xf32>
    %278 = arith.subf %272, %277 : vector<8x512xf32>
    %279 = arith.mulf %278, %278 : vector<8x512xf32>
    %cst_88 = arith.constant dense<0.000000e+00> : vector<8xf32>
    %280 = vector.multi_reduction <add>, %279, %cst_88 [1] : vector<8x512xf32> to vector<8xf32>
    %281 = vector.shape_cast %280 : vector<8xf32> to vector<8x1xf32>
    %cst_89 = arith.constant 0.001953125 : f32
    %282 = vector.broadcast %cst_89 : f32 to vector<8x1xf32>
    %283 = arith.mulf %281, %282 : vector<8x1xf32>
    %cst_90 = arith.constant 9.99999974E-6 : f32
    %284 = vector.broadcast %cst_90 : f32 to vector<8x1xf32>
    %285 = arith.addf %283, %284 : vector<8x1xf32>
    %286 = math.rsqrt %285 : vector<8x1xf32>
    %c0_91 = arith.constant 0 : index
    %c0_92 = arith.constant 0 : index
    %287 = vector.load %arg4[%c0_91, %c0_92] : memref<8x1xf32, #tpu.memory_space<vmem>>, vector<8x1xf32>
    %288 = arith.mulf %286, %287 : vector<8x1xf32>
    %289 = vector.broadcast %288 : vector<8x1xf32> to vector<8x512xf32>
    %290 = arith.mulf %278, %289 : vector<8x512xf32>
    %c0_93 = arith.constant 0 : index
    %c0_94 = arith.constant 0 : index
    %291 = vector.load %arg5[%c0_93, %c0_94] : memref<8x1xf32, #tpu.memory_space<vmem>>, vector<8x1xf32>
    %292 = vector.broadcast %291 : vector<8x1xf32> to vector<8x512xf32>
    %293 = arith.addf %290, %292 : vector<8x512xf32>
    %cst_95 = arith.constant 0.000000e+00 : f32
    %294 = vector.broadcast %cst_95 : f32 to vector<8x512xf32>
    %295 = arith.maximumf %293, %294 : vector<8x512xf32>
    %c0_96 = arith.constant 0 : index
    %c0_97 = arith.constant 0 : index
    %c0_98 = arith.constant 0 : index
    %296 = vector.load %arg6[%c0_96, %c0_97, %c0_98] : memref<1x8x512xf32, #tpu.memory_space<vmem>>, vector<1x8x512xf32>
    %297 = vector.shape_cast %296 : vector<1x8x512xf32> to vector<8x512xf32>
    %298 = vector.shape_cast %295 : vector<8x512xf32> to vector<1x8x512xf32>
    tpu.vector_store %arg6[%c0_96, %c0_97, %c0_98], %298 {strides = array<i32>} : memref<1x8x512xf32, #tpu.memory_space<vmem>>, vector<1x8x512xf32>,
    return
  }
  func.func @transform_0(%arg0: i32) -> (i32, i32, i32) {
    %c0_i32 = arith.constant 0 : i32
    %c0_i32_0 = arith.constant 0 : i32
    %c0_i32_1 = arith.constant 0 : i32
    return %arg0, %c0_i32, %c0_i32_0 : i32, i32, i32
  }
  func.func @transform_1(%arg0: i32) -> (i32, i32, i32) {
    %c0_i32 = arith.constant 0 : i32
    %c0_i32_0 = arith.constant 0 : i32
    %c0_i32_1 = arith.constant 0 : i32
    %c0_i32_2 = arith.constant 0 : i32
    return %c0_i32, %c0_i32_0, %c0_i32_1 : i32, i32, i32
  }
  func.func @transform_2(%arg0: i32) -> (i32, i32) {
    %c0_i32 = arith.constant 0 : i32
    %c0_i32_0 = arith.constant 0 : i32
    %c0_i32_1 = arith.constant 0 : i32
    return %c0_i32, %c0_i32_0 : i32, i32
  }
  func.func @transform_3(%arg0: i32) -> (i32, i32) {
    %c0_i32 = arith.constant 0 : i32
    %c0_i32_0 = arith.constant 0 : i32
    %c0_i32_1 = arith.constant 0 : i32
    return %c0_i32, %c0_i32_0 : i32, i32
  }
  func.func @transform_4(%arg0: i32) -> (i32, i32) {
    %c0_i32 = arith.constant 0 : i32
    %c0_i32_0 = arith.constant 0 : i32
    %c0_i32_1 = arith.constant 0 : i32
    return %c0_i32, %c0_i32_0 : i32, i32
  }
  func.func @transform_5(%arg0: i32) -> (i32, i32, i32) {
    %c0_i32 = arith.constant 0 : i32
    %c0_i32_0 = arith.constant 0 : i32
    %c0_i32_1 = arith.constant 0 : i32
    return %arg0, %c0_i32, %c0_i32_0 : i32, i32, i32
  }
}

</mosaic_0001>

<bundles_post_ra>
// kernel: tpu_custom_call.1
= control target key start
LH: loop header
LB: loop body
LE: loop exit
PB: predicated region body
PF: predicated region fallthrough
CT: control target
= control target key end

     0   :  { %10 = vsyncpa [#allocation3], 0  ;;  %s7871_s0 = inlined_call_operand.vmem [shape: f32[2,4,658], index: 0, kind: input, shape index: {}]   ;;  %s7872_s1 = inlined_call_operand.vmem [shape: f32[27,8,4], index: 1, kind: input, shape index: {}]   ;;  %s7873_s2 = inlined_call_operand.vmem [shape: f32[8,512], index: 2, kind: input, shape index: {}]   ;;  %s7874_s3 = inlined_call_operand.vmem [shape: f32[8,1], index: 3, kind: input, shape index: {}]   ;;  %s7875_s4 = inlined_call_operand.vmem [shape: f32[8,1], index: 4, kind: input, shape index: {}]   ;;  %s7876_s5 = inlined_call_operand.hbm [shape: f32[2,8,512], index: 5, kind: output, shape index: {}]  }
   0x1   :  { %12 = vsyncpa [#allocation3 + $0x1], 0  ;;  %s6627_s18 = smov 0   ;;  %s6629_s19 = smov 0  }
   0x2   :  { %s6631_s20 = smov 0   ;;  %s6633_s21 = smov 0  }
   0x3 LB: > { %s6648_s22 = sadd.s32 4294967295, %s6560_s21   ;;  %s6107_s23 = sadd.s32 4294967294, %s6560_s21   ;;  %s6560_s21 = sphi %s6633_s21, %s7885_s21   ;;  %s6556_s20 = sphi %s6631_s20, %s7884_s20   ;;  %s6552_s19 = sphi %s6629_s19, %s7883_s19   ;;  %s6548_s18 = sphi %s6627_s18, %s7882_s18  }
   0x4   : > { %s6652_s24 = sadd.s32 1, %s6560_s21   ;;  %s135_s25 = sadd.s32 1, %s6556_s20 }
   0x5   : > { %s132_s26 = ssub.s32 %s6560_s21, %s6652_s24  ;;  %p145_p0 = scmp.ne.s32.totalorder %s6556_s20, %s6552_s19 }
   0x6   : > { %p133_p1 = scmp.eq.s32.totalorder %s132_s26, 0  ;;  %p146_p2 = scmp.eq.s32.totalorder %s6648_s22, 1 }
   0x7   : > { %p151_p3 = scmp.ne.s32.totalorder %s6552_s19, %s6548_s18  ;;  %p152_p4 = scmp.eq.s32.totalorder %s6107_s23, 1 }
   0x8   : > { %s6663_s27 = scalar_select %p133_p1, %s6556_s20, %s135_s25  }
   0x9   : > { %p6665_p5 = por %p146_p2, %p145_p0  ;;  %p6669_p6 = por %p152_p4, %p151_p3 }
   0xa   : > { %p6110_p7 = scmp.ge.s32.totalorder %s6560_s21, 1  ;;  %p190_p8 = scmp.lt.s32.totalorder %s6560_s21, 3 }
   0xc   : > { %p191_p9 = pnand %p6110_p7, %p190_p8 }
   0xe   : > { %194 = sbr.rel (%p191_p9) target bundleno = 1247 (0x4df), region = 40 }
  0x15   : > { %v6678_v0 = vld [vmem:[%s7873_s2 + $0x10] sm:$0xff]  ;;  %v6683_v1 = vld [vmem:[%s7873_s2 + $0x18] sm:$0xff]  ;;  %v258_v2 = vlaneseq  ;;  %v6688_v3 = vld [vmem:[%s7873_s2] sm:$0xff]  ;;  %s6562_s13 = smov 8   ;;  %s6563_s14 = smov 1   ;;  %vm313_vm0 = vcmask 7168  }
  0x16   : > { %v6691_v4 = vrot.slane %v6678_v0, 4  ;;  %v6694_v5 = vrot.slane %v6683_v1, 4  ;;  %v6699_v6 = vld [vmem:[%s7873_s2 + $0x8] sm:$0xff]  ;;  %v234_v7 = vrot.slane %v6688_v3, 2  ;;  %v6703_v8 = vrot.slane %v6688_v3, 5  ;;  %s6564_s15 = smov 2  }
  0x17   : > { %v6705_v9 = vshrl.u32 %v258_v2, 7  ;;  %v235_v10 = vrot.slane %v6699_v6, 2  ;;  %v6709_v11 = vrot.slane %v6699_v6, 5  ;;  %v236_v12 = vrot.slane %v6678_v0, 2  ;;  %s6565_s16 = smov 9   ;;  %s6566_s17 = smov 10  }
  0x18   : > { %v6714_v13 = vmul.f32 %v6691_v4, %v6678_v0  ;;  %v6718_v14 = vmul.f32 %v6694_v5, %v6683_v1  ;;  %v6721_v15 = vmul.f32 %v234_v7, %v6688_v3  ;;  %v237_v16 = vrot.slane %v6683_v1, 2  ;;  %s6567_s23 = smov 16   ;;  %s6568_s25 = smov 17  }
  0x19   : > { %v6725_v17 = vsub.s32 0, %v6705_v9  ;;  %v6728_v18 = vmul.f32 %v235_v10, %v6699_v6  ;;  %v6731_v19 = vmul.f32 %v236_v12, %v6678_v0  ;;  %v6734_v20 = vrot.slane %v6678_v0, 5  ;;  %s6569_s26 = smov 18   ;;  %s6570_s30 = smov 64  }
  0x1a   : > { %v665_v21 = vmul.f32 %v6703_v8, %v6721_v15  ;;  %v6739_v22 = vmul.f32 %v237_v16, %v6683_v1  ;;  %v6742_v23 = vrot.slane %v6683_v1, 5  ;;  %v6745_v24 = vrot.slane %v6688_v3, 4  ;;  %s6571_s6 = smov 65   ;;  %s6572_s7 = smov 66  }
  0x1b   : > { %v901_v25 = vrot.slane %v6714_v13, %v6725_v17  ;;  %v905_v26 = vrot.slane %v6718_v14, %v6725_v17  ;;  %v288_v27 = vrot.slane %v6721_v15, %v6725_v17  ;;  %v292_v28 = vrot.slane %v6728_v18, %v6725_v17  ;;  %s6573_s8 = smov 72   ;;  %s6574_s9 = smov 74  }
  0x1c   : > { %v666_v29 = vmul.f32 %v6709_v11, %v6728_v18  ;;  %v672_v30 = vrot.slane %v665_v21, %v6725_v17  ;;  %v296_v31 = vrot.slane %v6731_v19, %v6725_v17  ;;  %v300_v32 = vrot.slane %v6739_v22, %v6725_v17  ;;  %p218_p10 = scmp.lt.s32.totalorder %s6648_s22, 1  ;;  %s6589_s12 = smov 56  }
  0x1d   : > { %v911_v33 = vcombine.low %v901_v25, %v905_v26  ;;  %v305_v34 = vcombine.low %v288_v27, %v292_v28  ;;  %v667_v35 = vmul.f32 %v6734_v20, %v6731_v19  ;;  %v668_v36 = vmul.f32 %v6742_v23, %v6739_v22 }
  0x1e   : > { %v676_v37 = vrot.slane %v666_v29, %v6725_v17  ;;  %v306_v38 = vcombine.low %v296_v31, %v300_v32  ;;  %v6768_v39 = vrot.slane %v6699_v6, 4  ;;  %v6772_v40 = vmul.f32 %v6745_v24, %v6688_v3  ;;  %s219_s10 = scalar_select %p218_p10, %s6648_s22, 1 }
  0x1f   : > { %914 = vrot.lane.b32.xlu1 %v911_v33, %s6562_s13  ;;  %307 = vrot.lane.b32.xlu0 %v305_v34, %s6563_s14  ;;  %v680_v41 = vrot.slane %v667_v35, %v6725_v17  ;;  %v684_v42 = vrot.slane %v668_v36, %v6725_v17  ;;  %v1118_v43 = vrot.slane %v6678_v0, %v6725_v17  ;;  %v6780_v44 = vrot.slane %v6678_v0, 3 }
  0x20   : > { %v689_v45 = vcombine.low %v672_v30, %v676_v37  ;;  %v6784_v46 = vmul.f32 %v6768_v39, %v6699_v6  ;;  %v893_v47 = vrot.slane %v6772_v40, %v6725_v17  ;;  %v1122_v48 = vrot.slane %v6683_v1, %v6725_v17  ;;  %s6411_s11 = smul.u32 24, %s219_s10  ;;  %s6586_s10 = smov 82  }
  0x21   : > { %v1110_v49 = vrot.slane %v6688_v3, %v6725_v17  ;;  %v1114_v50 = vrot.slane %v6699_v6, %v6725_v17  ;;  %v1326_v52 = vmul.f32 %v6734_v20, %v6678_v0  ;;  %v1327_v53 = vmul.f32 %v6742_v23, %v6683_v1 }
  0x22   : > { %v897_v51 = vrot.slane %v6784_v46, %v6725_v17  ;;  %v1324_v54 = vmul.f32 %v6703_v8, %v6688_v3  ;;  %v690_v55 = vcombine.low %v680_v41, %v684_v42  ;;  %v1325_v56 = vmul.f32 %v6709_v11, %v6699_v6 }
  0x23   : > { %691 = vrot.lane.b32.xlu1 %v689_v45, %s6564_s15  ;;  %309 = vrot.lane.b32.xlu0 %v306_v38, %s6563_s14  ;;  %v6805_v57 = vrot.slane %v6683_v1, 3  ;;  %v1128_v59 = vcombine.low %v1118_v43, %v1122_v48  ;;  %v6809_v60 = vmul.f32 %v6780_v44, %v6678_v0  ;;  %v1127_v61 = vcombine.low %v1110_v49, %v1114_v50  ;;  %s6898_s14 = scalar_lea.vmem %s7871_s0, %s6411_s11  ;;  %s6587_s11 = smov 63  }
  0x24   : > { %v910_v58 = vcombine.low %v893_v47, %v897_v51  ;;  %v6816_v63 = vrot.slane %v6688_v3, 3  ;;  %v6819_v2 = vrot.slane %v6699_v6, 3  ;;  %v1339_v7 = vrot.slane %v1326_v52, %v6725_v17 }
  0x25   : > { %v6813_v62 = vmul.f32 %v6805_v57, %v6683_v1  ;;  %v1343_v10 = vrot.slane %v1327_v53, %v6725_v17  ;;  %v1331_v12 = vrot.slane %v1324_v54, %v6725_v17  ;;  %v1335_v16 = vrot.slane %v1325_v56, %v6725_v17 }
  0x26   : > { %v1559_v21 = vmul.f32 %v6809_v60, %v6691_v4  ;;  %v6832_v26 = vmul.f32 %v6816_v63, %v6688_v3  ;;  %v6836_v27 = vmul.f32 %v6819_v2, %v6699_v6  ;;  %v1789_v36 = vrot.slane %v6809_v60, %v6725_v17 }
  0x27   : > { %693 = vrot.lane.b32.xlu1 %v690_v55, %s6564_s15  ;;  %912 = vrot.lane.b32.xlu0 %v910_v58, %s6562_s13  ;;  %v1560_v25 = vmul.f32 %v6813_v62, %v6694_v5  ;;  %v1349_v29 = vcombine.low %v1339_v7, %v1343_v10  ;;  %v1348_v30 = vcombine.low %v1331_v12, %v1335_v16  ;;  %v2218_v52 = vsub.s32 2, %v6705_v9  ;;  %s6575_s15 = smov 127   ;;  %s6590_s13 = smov 55  }
  0x28   : > { %v1557_v28 = vmul.f32 %v6832_v26, %v6745_v24  ;;  %v1558_v31 = vmul.f32 %v6836_v27, %v6768_v39  ;;  %v1572_v32 = vrot.slane %v1559_v21, %v6725_v17  ;;  %v1793_v37 = vrot.slane %v6813_v62, %v6725_v17 }
  0x29   : > { %v1576_v33 = vrot.slane %v1560_v25, %v6725_v17  ;;  %v1997_v38 = vmul.f32 %v6809_v60, %v6734_v20  ;;  %v1781_v41 = vrot.slane %v6832_v26, %v6725_v17  ;;  %v1785_v42 = vrot.slane %v6836_v27, %v6725_v17 }
  0x2a   : > { %v1564_v34 = vrot.slane %v1557_v28, %v6725_v17  ;;  %v1568_v35 = vrot.slane %v1558_v31, %v6725_v17  ;;  %v1995_v43 = vmul.f32 %v6832_v26, %v6703_v8  ;;  %v1998_v45 = vmul.f32 %v6813_v62, %v6742_v23 }
  0x2b   : > { %1131 = vrot.lane.b32.xlu1 %v1128_v59, %s6565_s16  ;;  %1129 = vrot.lane.b32.xlu0 %v1127_v61, %s6565_s16  ;;  %v1582_v47 = vcombine.low %v1572_v32, %v1576_v33  ;;  %v1996_v20 = vmul.f32 %v6836_v27, %v6709_v11  ;;  %v1799_v49 = vcombine.low %v1789_v36, %v1793_v37  ;;  %v3264_v37 = vsub.s32 5, %v6705_v9  ;;  %s6576_s16 = smov 120  }
  0x2c   : > { %v1581_v48 = vcombine.low %v1564_v34, %v1568_v35  ;;  %v1798_v50 = vcombine.low %v1781_v41, %v1785_v42  ;;  %v2002_v51 = vrot.slane %v1995_v43, %v6725_v17  ;;  %v2010_v23 = vrot.slane %v1997_v38, %v6725_v17 }
  0x2d   : > { %v2006_v8 = vrot.slane %v1996_v20, %v6725_v17  ;;  %v2014_v53 = vrot.slane %v1998_v45, %v6725_v17  ;;  %v2219_v54 = vrot.slane %v6721_v15, %v2218_v52  ;;  %v2223_v55 = vrot.slane %v6728_v18, %v2218_v52 }
  0x2e   : > { %v2227_v11 = vrot.slane %v6731_v19, %v2218_v52  ;;  %v2231_v59 = vrot.slane %v6739_v22, %v2218_v52  ;;  %v2443_v7 = vrot.slane %v6678_v0, %v2218_v52  ;;  %v2447_v10 = vrot.slane %v6683_v1, %v2218_v52 }
  0x2f   : > { %1352 = vrot.lane.b32.xlu1 %v1349_v29, %s6566_s17  ;;  %1350 = vrot.lane.b32.xlu0 %v1348_v30, %s6566_s17  ;;  %v2019_v56 = vcombine.low %v2002_v51, %v2006_v8  ;;  %v2020_v58 = vcombine.low %v2010_v23, %v2014_v53  ;;  %v2236_v61 = vcombine.low %v2219_v54, %v2223_v55  ;;  %v2868_v30 = vsub.s32 4, %v6705_v9  ;;  %v6903_v55 = vld [vmem:[%s6898_s14 + $0x10] sm:$0xff]  ;;  %s6577_s17 = smov 119  }
  0x30   : > { %v2237_v12 = vcombine.low %v2227_v11, %v2231_v59  ;;  %v2435_v16 = vrot.slane %v6688_v3, %v2218_v52  ;;  %v2439_v21 = vrot.slane %v6699_v6, %v2218_v52  ;;  %v2453_v25 = vcombine.low %v2443_v7, %v2447_v10 }
  0x31   : > { %v2652_v28 = vrot.slane %v6832_v26, %v2218_v52  ;;  %v2656_v29 = vrot.slane %v6836_v27, %v2218_v52  ;;  %v2660_v32 = vrot.slane %v6809_v60, %v2218_v52  ;;  %v2664_v33 = vrot.slane %v6813_v62, %v2218_v52 }
  0x32   : > { %v2452_v31 = vcombine.low %v2435_v16, %v2439_v21  ;;  %v2877_v35 = vrot.slane %v6678_v0, %v2868_v30  ;;  %v2881_v36 = vrot.slane %v6683_v1, %v2868_v30  ;;  %v2869_v41 = vrot.slane %v6688_v3, %v2868_v30 }
  0x33   : > { %1585 = vrot.lane.b32.xlu1 %v1582_v47, %s6567_s23  ;;  %1583 = vrot.lane.b32.xlu0 %v1581_v48, %s6567_s23  ;;  %v2669_v34 = vcombine.low %v2652_v28, %v2656_v29  ;;  %v2670_v38 = vcombine.low %v2660_v32, %v2664_v33  ;;  %v2873_v42 = vrot.slane %v6699_v6, %v2868_v30  ;;  %vm1135_vm1 = vcmask 72704   ;;  %s6578_s23 = smov 126  }
  0x34   : > { %v2887_v43 = vcombine.low %v2877_v35, %v2881_v36  ;;  %v3273_v45 = vrot.slane %v6678_v0, %v3264_v37  ;;  %v3277_v47 = vrot.slane %v6683_v1, %v3264_v37  ;;  %v3265_v20 = vrot.slane %v6688_v3, %v3264_v37  ;;  %v6920_v35 = vld [vmem:[%s6898_s14] sm:$0xff] }
  0x35   : > { %v2886_v48 = vcombine.low %v2869_v41, %v2873_v42  ;;  %vm697_vm2 = vcmask 15360   ;;  %vm918_vm3 = vcmask 64512   ;;  %vm315_vm4 = vcmask 1043456  }
  0x36   : > { %vm1356_vm5 = vcmask 80896   ;;  %vm1589_vm6 = vcmask 130048   ;;  %vm1806_vm7 = vcmask 138240   ;;  %vm2027_vm8 = vcmask 146432  }
  0x37   : > { %1802 = vrot.lane.b32.xlu1 %v1799_v49, %s6568_s25  ;;  %1800 = vrot.lane.b32.xlu0 %v1798_v50, %s6568_s25  ;;  %v3269_v49 = vrot.slane %v6699_v6, %v3264_v37  ;;  %v3283_v50 = vcombine.low %v3273_v45, %v3277_v47  ;;  %s6579_s25 = smov 118   ;;  %vm2244_vm9 = vcmask 523264   ;;  %vm2460_vm10 = vcmask 531456  }
  0x38   : > { %vm2677_vm11 = vcmask 539648   ;;  %vm2894_vm12 = vcmask 588800   ;;  %vm3290_vm13 = vcmask 605184   ;;  %vm341_vm14 = vcmask 1039360  }
  0x39   : > { %v3282_v51 = vcombine.low %v3265_v20, %v3269_v49  ;;  %vm346_vm15 = vcmask 31744  }
  0x3b   : > { %2021 = vrot.lane.b32.xlu0 %v2019_v56, %s6569_s26  ;;  %2023 = vrot.lane.b32.xlu1 %v2020_v58, %s6569_s26  ;;  %s6581_s26 = smov 80  }
  0x3f   : > { %2238 = vrot.lane.b32.xlu1 %v2236_v61, %s6570_s30  ;;  %2240 = vrot.lane.b32.xlu0 %v2237_v12, %s6570_s30 }
  0x43   : > { %2456 = vrot.lane.b32.xlu0 %v2453_v25, %s6571_s6  ;;  %2454 = vrot.lane.b32.xlu1 %v2452_v31, %s6571_s6  ;;  %s6582_s6 = smov 112  }
  0x47   : > { %2671 = vrot.lane.b32.xlu0 %v2669_v34, %s6572_s7  ;;  %2673 = vrot.lane.b32.xlu1 %v2670_v38, %s6572_s7  ;;  %s6583_s7 = smov 111  }
  0x4b   : > { %2890 = vrot.lane.b32.xlu0 %v2887_v43, %s6573_s8  ;;  %2888 = vrot.lane.b32.xlu1 %v2886_v48, %s6573_s8  ;;  %s6584_s8 = smov 110  }
  0x4f   : > { %3286 = vrot.lane.b32.xlu0 %v3283_v50, %s6574_s9  ;;  %3284 = vrot.lane.b32.xlu1 %v3282_v51, %s6574_s9  ;;  %s6585_s9 = smov 81  }
  0x91   : > { %v6893_v52 = vpop.permute.xlu1 %914  ;;  %v308_v8 = vpop.permute.xlu0 %307 }
  0x92   : > { %v917_v11 = vrot.slane %v6893_v52, 4  ;;  %v311_v25 = vrot.slane %v308_v8, 4 }
  0x94   : > { %v927_v61 = vmul.f32 %v917_v11, %v6903_v55  ;;  %v314_v33 = vsel %vm313_vm0, %v311_v25, %v308_v8 }
  0x95   : > { %v6900_v23 = vpop.permute.xlu1 %691  ;;  %v310_v53 = vpop.permute.xlu0 %309  ;;  %v321_v42 = vmul.f32 %v314_v33, %v6920_v35 }
  0x96   : > { %v312_v54 = vrot.slane %v310_v53, 4  ;;  %v695_v34 = vrot.slane %v6900_v23, 4 }
  0x97   : > { %v329_v33 = vcombine.high %v321_v42, %v321_v42 }
  0x98   : > { %v323_v56 = vmul.f32 %v312_v54, %v6903_v55  ;;  %v698_v43 = vsel %vm697_vm2, %v695_v34, %v6900_v23  ;;  %v316_v8 = vsel %vm315_vm4, %v311_v25, %v312_v54 }
  0x99   : > { %v6907_v58 = vpop.permute.xlu1 %693  ;;  %v913_v59 = vpop.permute.xlu0 %912  ;;  %v6935_v49 = vmul.f32 %v698_v43, %v6920_v35 }
  0x9a   : > { %339 = vrot.lane.b32.xlu0 %v323_v56, %s6575_s15  ;;  %v696_v12 = vrot.slane %v6907_v58, 4  ;;  %v916_v38 = vrot.slane %v913_v59, 4 }
  0x9c   : > { %v706_v31 = vmul.f32 %v696_v12, %v6903_v55  ;;  %v919_v45 = vsel %vm918_vm3, %v916_v38, %v913_v59  ;;  %v6946_v59 = vld [vmem:[%s6898_s14 + $0x8] sm:$0xff]  ;;  %v920_v54 = vsel %vm315_vm4, %v916_v38, %v917_v11  ;;  %v3480_v11 = vrot.slane %v6699_v6, 1 }
  0x9d   : > { %v1132_v7 = vpop.permute.xlu1 %1131  ;;  %v1130_v16 = vpop.permute.xlu0 %1129  ;;  %v925_v50 = vmul.f32 %v919_v45, %v6920_v35 }
  0x9e   : > { %v1134_v10 = vrot.slane %v1132_v7, 4  ;;  %943 = vrot.lane.b32.xlu0 %v927_v61, %s6576_s16  ;;  %v1133_v30 = vrot.slane %v1130_v16, 4  ;;  %v6985_v43 = vmul.f32 %v3480_v11, %v6699_v6  ;;  %v3482_v11 = vrot.slane %v6683_v1, 1 }
  0xa0   : > { %v1144_v21 = vmul.f32 %v1134_v10, %v6903_v55  ;;  %v1136_v36 = vsel %vm1135_vm1, %v1133_v30, %v1130_v16  ;;  %v1137_v48 = vsel %vm315_vm4, %v1133_v30, %v1134_v10  ;;  %v317_v10 = vsel %vm313_vm0, %v316_v8, %v310_v53 }
  0xa1   : > { %v1353_v28 = vpop.permute.xlu1 %1352  ;;  %v1351_v37 = vpop.permute.xlu0 %1350  ;;  %v1142_v41 = vmul.f32 %v1136_v36, %v6920_v35  ;;  %v1138_v51 = vsel %vm1135_vm1, %v1137_v48, %v1132_v7  ;;  %v6580_v16 = vmov 0.0   ;;  %v322_v25 = vmul.f32 %v317_v10, %v6946_v59 }
  0xa2   : > { %v1355_v29 = vrot.slane %v1353_v28, 4  ;;  %1160 = vrot.lane.b32.xlu1 %v1144_v21, %s6577_s17  ;;  %v1354_v47 = vrot.slane %v1351_v37, 4  ;;  %v6949_v61 = vmul.f32 %v1138_v51, %v6946_v59  ;;  %422 = vmatprep.mubr.f32.mxu0 %v6580_v16  ;;  %v921_v53 = vsel %vm918_vm3, %v920_v54, %v6893_v52 }
  0xa3   : > { %493 = vmatprep.mubr.f32.mxu1 %v6580_v16  ;;  %v3479_v30 = vrot.slane %v6688_v3, 1  ;;  %vm3519_vm0 = vcmask 654336   ;;  %vm724_vm1 = vcmask 1031168   ;;  %vm1162_vm3 = vcmask 973824  }
  0xa4   : > { %v1365_v32 = vmul.f32 %v1355_v29, %v6903_v55  ;;  %v1357_v20 = vsel %vm1356_vm5, %v1354_v47, %v1351_v37  ;;  %v1358_v56 = vsel %vm315_vm4, %v1354_v47, %v1355_v29 }
  0xa5   : > { %v1363_v23 = vmul.f32 %v1357_v20, %v6920_v35  ;;  %v1359_v7 = vsel %vm1356_vm5, %v1358_v56, %v1353_v28  ;;  %v1586_v28 = vpop.permute.xlu1 %1585  ;;  %v1584_v29 = vpop.permute.xlu0 %1583  ;;  %v6979_v38 = vmul.f32 %v3479_v30, %v6688_v3  ;;  %vm1383_vm5 = vcmask 965632  }
  0xa6   : > { %722 = vrot.lane.b32.xlu1 %v706_v31, %s6578_s23  ;;  %1381 = vrot.lane.b32.xlu0 %v1365_v32, %s6579_s25  ;;  %v6960_v21 = vmul.f32 %v1359_v7, %v6946_v59  ;;  %v699_v31 = vsel %vm315_vm4, %v695_v34, %v696_v12  ;;  %v6972_v32 = vmul.f32 %v921_v53, %v6946_v59  ;;  %v1588_v12 = vrot.slane %v1586_v28, 4 }
  0xa7   : > { %v700_v52 = vsel %vm697_vm2, %v699_v31, %v6907_v58  ;;  %v1587_v34 = vrot.slane %v1584_v29, 4  ;;  %v1150_v58 = vcombine.high %v1142_v41, %v1142_v41  ;;  %v1371_v56 = vcombine.high %v1363_v23, %v1363_v23 }
  0xa8   : > { %v705_v45 = vmul.f32 %v700_v52, %v6946_v59  ;;  %v3481_v31 = vrot.slane %v6678_v0, 1  ;;  %vm945_vm2 = vcmask 982016  }
  0xa9   : > { %v6976_v36 = vpop.permute.xlu1 %1802  ;;  %v1801_v37 = vpop.permute.xlu0 %1800  ;;  %v1591_v8 = vsel %vm315_vm4, %v1587_v34, %v1588_v12 }
  0xaa   : > { %1152 = vrot.lane.b32.xlu1 %v1142_v41, %s6577_s17  ;;  %331 = vrot.lane.b32.xlu0 %v321_v42, %s6575_s15  ;;  %v6988_v42 = vsub.s32 3, %v6705_v9  ;;  %v1805_v47 = vrot.slane %v6976_v36, 4  ;;  %v1804_v48 = vrot.slane %v1801_v37, 4  ;;  %v933_v41 = vcombine.high %v925_v50, %v925_v50 }
  0xab   : > { %v1592_v7 = vsel %vm1589_vm6, %v1591_v8, %v1586_v28  ;;  %v1590_v28 = vsel %vm1589_vm6, %v1587_v34, %v1584_v29  ;;  %v7027_v29 = vmul.f32 %v3482_v11, %v6683_v1  ;;  %vm1616_vm6 = vcmask 916480  }
  0xac   : > { %v3494_v20 = vrot.slane %v6979_v38, %v6988_v42  ;;  %v3498_v51 = vrot.slane %v6985_v43, %v6988_v42  ;;  %v1808_v10 = vsel %vm315_vm4, %v1804_v48, %v1805_v47  ;;  %v7006_v30 = vmul.f32 %v1592_v7, %v6946_v59 }
  0xad   : > { %v1809_v53 = vsel %vm1806_vm7, %v1808_v10, %v6976_v36  ;;  %v1596_v52 = vmul.f32 %v1590_v28, %v6920_v35  ;;  %v1807_v36 = vsel %vm1806_vm7, %v1804_v48, %v1801_v37  ;;  %v3506_v48 = vrot.slane %v7027_v29, %v6988_v42  ;;  %v2022_v8 = vpop.permute.xlu0 %2021 }
  0xae   : > { %714 = vrot.lane.b32.xlu1 %v6935_v49, %s6578_s23  ;;  %935 = vrot.lane.b32.xlu0 %v925_v50, %s6576_s16  ;;  %v3511_v54 = vcombine.low %v3494_v20, %v3498_v51  ;;  %v1814_v50 = vmul.f32 %v1809_v53, %v6946_v59  ;;  %v1813_v34 = vmul.f32 %v1807_v36, %v6920_v35  ;;  %vm1833_vm7 = vcmask 908288  }
  0xaf   : > { %v1604_v20 = vcombine.high %v1596_v52, %v1596_v52  ;;  %v934_v10 = vcombine.high %v6972_v32, %v6972_v32  ;;  %v1815_v53 = vmul.f32 %v1805_v47, %v6903_v55  ;;  %v3723_v28 = vrot.slane %v6683_v1, %v6988_v42 }
  0xb0   : > { %v1821_v51 = vcombine.high %v1813_v34, %v1813_v34  ;;  %v3711_v11 = vrot.slane %v6688_v3, %v6988_v42  ;;  %v3715_v47 = vrot.slane %v6699_v6, %v6988_v42  ;;  %v1605_v6 = vcombine.high %v7006_v30, %v7006_v30 }
  0xb1   : > { %v2241_v36 = vpop.permute.xlu0 %2240 }
  0xb2   : > { %1156 = vrot.lane.b32.xlu1 %v6949_v61, %s6577_s17  ;;  %1373 = vrot.lane.b32.xlu0 %v1363_v23, %s6579_s25  ;;  %v330_v23 = vcombine.high %v322_v25, %v322_v25  ;;  %v3728_v1 = vcombine.low %v3711_v11, %v3715_v47 }
  0xb6   : > { %1377 = vrot.lane.b32.xlu1 %v6960_v21, %s6579_s25  ;;  %335 = vrot.lane.b32.xlu0 %v322_v25, %s6575_s15  ;;  %v7024_v25 = vmul.f32 %v3481_v31, %v6678_v0 }
  0xb8   : > { %v3502_v37 = vrot.slane %v7024_v25, %v6988_v42 }
  0xba   : > { %939 = vrot.lane.b32.xlu0 %v6972_v32, %s6576_s16  ;;  %333 = vrot.lane.b32.xlu1 %v329_v33, %s6575_s15  ;;  %v712_v33 = vcombine.high %v6935_v49, %v6935_v49  ;;  %v1598_v49 = vmul.f32 %v1588_v12, %v6903_v55  ;;  %v713_v12 = vcombine.high %v705_v45, %v705_v45 }
  0xbe   : > { %1154 = vrot.lane.b32.xlu0 %v1150_v58, %s6577_s17  ;;  %718 = vrot.lane.b32.xlu1 %v705_v45, %s6578_s23  ;;  %v1151_v58 = vcombine.high %v6949_v61, %v6949_v61  ;;  %v3512_v61 = vcombine.low %v3502_v37, %v3506_v48  ;;  %v1372_v45 = vcombine.high %v6960_v21, %v6960_v21 }
  0xbf   : > { %v3932_v37 = vrot.slane %v6728_v18, %v6988_v42 }
  0xc2   : > { %1375 = vrot.lane.b32.xlu0 %v1371_v56, %s6579_s25  ;;  %937 = vrot.lane.b32.xlu1 %v933_v41, %s6576_s16  ;;  %v2025_v56 = vrot.slane %v2022_v8, 4 }
  0xc4   : > { %v2028_v41 = vsel %vm2027_vm8, %v2025_v56, %v2022_v8 }
  0xc5   : > { %v2034_v7 = vmul.f32 %v2028_v41, %v6920_v35 }
  0xc6   : > { %3513 = vrot.lane.b32.xlu0 %v3511_v54, %s6581_s26  ;;  %1610 = vrot.lane.b32.xlu1 %v7006_v30, %s6582_s6  ;;  %v2024_v54 = vpop.permute.xlu1 %2023 }
  0xc7   : > { %v2026_v31 = vrot.slane %v2024_v54, 4  ;;  %v2042_v32 = vcombine.high %v2034_v7, %v2034_v7 }
  0xc9   : > { %v2029_v21 = vsel %vm315_vm4, %v2025_v56, %v2026_v31  ;;  %v2036_v56 = vmul.f32 %v2026_v31, %v6903_v55 }
  0xca   : > { %1827 = vrot.lane.b32.xlu0 %v1814_v50, %s6583_s7  ;;  %337 = vrot.lane.b32.xlu1 %v330_v23, %s6575_s15  ;;  %v3719_v23 = vrot.slane %v6678_v0, %v6988_v42  ;;  %v2239_v3 = vpop.permute.xlu1 %2238 }
  0xcc   : > { %v3729_v0 = vcombine.low %v3719_v23, %v3723_v28 }
  0xce   : > { %716 = vrot.lane.b32.xlu0 %v712_v33, %s6578_s23  ;;  %1606 = vrot.lane.b32.xlu1 %v1596_v52, %s6582_s6  ;;  %v1822_v33 = vcombine.high %v1814_v50, %v1814_v50  ;;  %v2030_v52 = vsel %vm2027_vm8, %v2029_v21, %v2024_v54  ;;  %v3936_v54 = vrot.slane %v6731_v19, %v6988_v42  ;;  %vm3736_vm8 = vcmask 662528  }
  0xcf   : > { %v2035_v50 = vmul.f32 %v2030_v52, %v6946_v59 }
  0xd2   : > { %1158 = vrot.lane.b32.xlu0 %v1151_v58, %s6577_s17  ;;  %1614 = vrot.lane.b32.xlu1 %v1598_v49, %s6582_s6  ;;  %v2242_v58 = vrot.slane %v2239_v3, 4  ;;  %v3928_v49 = vrot.slane %v6721_v15, %v6988_v42 }
  0xd4   : > { %v2245_v30 = vsel %vm2244_vm9, %v2242_v58, %v2239_v3 }
  0xd6   : > { %1608 = vrot.lane.b32.xlu0 %v1604_v20, %s6582_s6  ;;  %1825 = vrot.lane.b32.xlu1 %v1821_v51, %s6583_s7  ;;  %v2043_v20 = vcombine.high %v2035_v50, %v2035_v50  ;;  %v3945_v51 = vcombine.low %v3928_v49, %v3932_v37 }
  0xda   : > { %720 = vrot.lane.b32.xlu0 %v713_v12, %s6578_s23  ;;  %3515 = vrot.lane.b32.xlu1 %v3512_v61, %s6581_s26  ;;  %v2251_v61 = vmul.f32 %v2245_v30, %v6920_v35  ;;  %v2455_v12 = vpop.permute.xlu1 %2454  ;;  %s6591_s26 = smov 54  }
  0xde   : > { %1823 = vrot.lane.b32.xlu0 %v1813_v34, %s6583_s7  ;;  %941 = vrot.lane.b32.xlu1 %v934_v10, %s6576_s16  ;;  %v2243_v34 = vrot.slane %v2241_v36, 4  ;;  %v2457_v10 = vpop.permute.xlu0 %2456 }
  0xdf   : > { %v2459_v23 = vrot.slane %v2457_v10, 4 }
  0xe0   : > { %v2246_v48 = vsel %vm315_vm4, %v2242_v58, %v2243_v34 }
  0xe1   : > { %v2247_v8 = vsel %vm2244_vm9, %v2246_v48, %v2241_v36  ;;  %v2469_v30 = vmul.f32 %v2459_v23, %v6903_v55 }
  0xe2   : > { %1831 = vrot.lane.b32.xlu0 %v1815_v53, %s6583_s7  ;;  %1379 = vrot.lane.b32.xlu1 %v1372_v45, %s6579_s25  ;;  %v2252_v41 = vmul.f32 %v2247_v8, %v6946_v59  ;;  %v2458_v53 = vrot.slane %v2455_v12, 4  ;;  %v2259_v45 = vcombine.high %v2251_v61, %v2251_v61 }
  0xe4   : > { %v2461_v31 = vsel %vm2460_vm10, %v2458_v53, %v2455_v12  ;;  %v2462_v11 = vsel %vm315_vm4, %v2458_v53, %v2459_v23 }
  0xe5   : > { %v2467_v47 = vmul.f32 %v2461_v31, %v6920_v35  ;;  %v2463_v21 = vsel %vm2460_vm10, %v2462_v11, %v2457_v10  ;;  %vm2054_vm10 = vcmask 900096  }
  0xe6   : > { %2046 = vrot.lane.b32.xlu0 %v2042_v32, %s6584_s8  ;;  %1829 = vrot.lane.b32.xlu1 %v1822_v33, %s6583_s7  ;;  %v2672_v32 = vpop.permute.xlu0 %2671  ;;  %v2468_v52 = vmul.f32 %v2463_v21, %v6946_v59 }
  0xe7   : > { %v2675_v33 = vrot.slane %v2672_v32, 4  ;;  %v2475_v36 = vcombine.high %v2467_v47, %v2467_v47 }
  0xe9   : > { %v2678_v3 = vsel %vm2677_vm11, %v2675_v33, %v2672_v32 }
  0xea   : > { %3732 = vrot.lane.b32.xlu0 %v3729_v0, %s6585_s9  ;;  %3730 = vrot.lane.b32.xlu1 %v3728_v1, %s6585_s9  ;;  %v2260_v0 = vcombine.high %v2252_v41, %v2252_v41  ;;  %v2891_v1 = vpop.permute.xlu0 %2890  ;;  %s215_s9 = sand.u32 1, %s6552_s19  }
  0xeb   : > { %v2893_v8 = vrot.slane %v2891_v1, 4 }
  0xee   : > { %1612 = vrot.lane.b32.xlu0 %v1605_v6, %s6582_s6  ;;  %2048 = vrot.lane.b32.xlu1 %v2035_v50, %s6584_s8  ;;  %v2674_v6 = vpop.permute.xlu1 %2673  ;;  %v2684_v50 = vmul.f32 %v2678_v3, %v6920_v35  ;;  %v7099_v49 = vpop.permute.xlu0 %3286 }
  0xef   : > { %v2676_v58 = vrot.slane %v2674_v6, 4 }
  0xf1   : > { %v2679_v37 = vsel %vm315_vm4, %v2675_v33, %v2676_v58  ;;  %v2686_v23 = vmul.f32 %v2676_v58, %v6903_v55 }
  0xf2   : > { %2050 = vrot.lane.b32.xlu0 %v2043_v20, %s6584_s8  ;;  %2044 = vrot.lane.b32.xlu1 %v2034_v7, %s6584_s8  ;;  %v3940_v7 = vrot.slane %v6739_v22, %v6988_v42  ;;  %v2253_v42 = vmul.f32 %v2243_v34, %v6903_v55  ;;  %v2476_v34 = vcombine.high %v2468_v52, %v2468_v52  ;;  %v2889_v48 = vpop.permute.xlu1 %2888 }
  0xf3   : > { %v2692_v20 = vcombine.high %v2684_v50, %v2684_v50 }
  0xf4   : > { %v3946_v28 = vcombine.low %v3936_v54, %v3940_v7 }
  0xf6   : > { %3947 = vrot.lane.b32.xlu0 %v3945_v51, %s6586_s10  ;;  %2052 = vrot.lane.b32.xlu1 %v2036_v56, %s6584_s8  ;;  %v2680_v51 = vsel %vm2677_vm11, %v2679_v37, %v2674_v6  ;;  %v3285_v12 = vpop.permute.xlu1 %3284  ;;  %v3289_v37 = vrot.slane %v7099_v49, 4  ;;  %vm3953_vm11 = vcmask 670720  }
  0xfa   : > { %2265 = vrot.lane.b32.xlu0 %v2252_v41, %s6570_s30  ;;  %2263 = vrot.lane.b32.xlu1 %v2259_v45, %s6570_s30  ;;  %v2685_v41 = vmul.f32 %v2680_v51, %v6946_v59 }
  0xfe   : > { %2261 = vrot.lane.b32.xlu0 %v2251_v61, %s6570_s30  ;;  %3949 = vrot.lane.b32.xlu1 %v3946_v28, %s6586_s10  ;;  %v2892_v61 = vrot.slane %v2889_v48, 4  ;;  %v2693_v28 = vcombine.high %v2685_v41, %v2685_v41  ;;  %s6593_s10 = smov 47  }
 0x100   : > { %v2895_v10 = vsel %vm2894_vm12, %v2892_v61, %v2889_v48  ;;  %v2896_v54 = vsel %vm315_vm4, %v2892_v61, %v2893_v8  ;;  %v3288_v48 = vrot.slane %v3285_v12, 4 }
 0x101   : > { %v2901_v7 = vmul.f32 %v2895_v10, %v6920_v35  ;;  %v2897_v31 = vsel %vm2894_vm12, %v2896_v54, %v2891_v1  ;;  %v7129_v1 = vmul.f32 %v6768_v39, %v6728_v18  ;;  %vm2487_vm12 = vcmask 515072  }
 0x102   : > { %2269 = vrot.lane.b32.xlu0 %v2253_v42, %s6570_s30  ;;  %2267 = vrot.lane.b32.xlu1 %v2260_v0, %s6570_s30  ;;  %s6588_s30 = smov 62   ;;  %v3292_v61 = vsel %vm315_vm4, %v3288_v48, %v3289_v37 }
 0x103   : > { %v2909_v42 = vcombine.high %v2901_v7, %v2901_v7 }
 0x106   : > { %2481 = vrot.lane.b32.xlu0 %v2468_v52, %s6587_s11  ;;  %2479 = vrot.lane.b32.xlu1 %v2475_v36, %s6587_s11  ;;  %v7125_v52 = vmul.f32 %v6745_v24, %v6721_v15  ;;  %v3088_v36 = vcombine.high %v6920_v35, %v6920_v35 }
 0x108   : > { %v261_v58 = vrot.slane %v7125_v52, %v6725_v17 }
 0x10a   : > { %2483 = vrot.lane.b32.xlu0 %v2476_v34, %s6587_s11  ;;  %2477 = vrot.lane.b32.xlu1 %v2467_v47, %s6587_s11  ;;  %v2902_v47 = vmul.f32 %v2897_v31, %v6946_v59  ;;  %v265_v34 = vrot.slane %v7129_v1, %v6725_v17 }
 0x10c   : > { %v7104_v56 = vpop.permute.xlu0 %339  ;;  %v2910_v0 = vcombine.high %v2902_v47, %v2902_v47  ;;  %v278_v51 = vcombine.low %v261_v58, %v265_v34  ;;  %v7167_v58 = vmul.f32 %v6691_v4, %v6731_v19  ;;  %v6113_v34 = vld [vmem:[%s7872_s1 + $0x8] sm:$0xff] }
 0x10e   : > { %2696 = vrot.lane.b32.xlu0 %v2692_v20, %s6588_s30  ;;  %2485 = vrot.lane.b32.xlu1 %v2469_v30, %s6587_s11  ;;  %s6306_s11 = sshll.u32 %s6648_s22, 9  ;;  %s6034_s22 = scalar_lea.sflag [#allocation3], %s215_s9 }
 0x110   : > { %v7110_v53 = vpop.permute.xlu0 %943 }
 0x112   : > { %2694 = vrot.lane.b32.xlu0 %v2684_v50, %s6588_s30  ;;  %2698 = vrot.lane.b32.xlu1 %v2685_v41, %s6588_s30  ;;  %v2903_v50 = vmul.f32 %v2893_v8, %v6903_v55  ;;  %v3291_v8 = vsel %vm3290_vm13, %v3288_v48, %v3285_v12  ;;  %v3089_v41 = vcombine.high %v6946_v59, %v6946_v59 }
 0x113   : > { %v3297_v10 = vmul.f32 %v3291_v8, %v6920_v35  ;;  %v269_v8 = vrot.slane %v7167_v58, %v6725_v17 }
 0x114   : > { %v7112_v45 = vpop.permute.xlu1 %1160 }
 0x116   : > { %2702 = vrot.lane.b32.xlu0 %v2686_v23, %s6588_s30  ;;  %2700 = vrot.lane.b32.xlu1 %v2693_v28, %s6588_s30  ;;  %v282_v23 = vmul.f32 %v278_v51, %v6920_v35  ;;  %v3293_v28 = vsel %vm3290_vm13, %v3292_v61, %v7099_v49  ;;  %v7171_v49 = vmul.f32 %v6694_v5, %v6739_v22  ;;  %vm2921_vm13 = vcmask 457728  }
 0x118   : > { %v7116_v32 = vpop.permute.xlu1 %722  ;;  %v7118_v11 = vpop.permute.xlu0 %1381  ;;  %7880 = vst [vmem:[#allocation5_spill] sm:$0xff] %v7171_v49  ;;  %v273_v61 = vrot.slane %v7171_v49, %v6725_v17 }
 0x11a   : > { %2915 = vrot.lane.b32.xlu0 %v2902_v47, %s6589_s12  ;;  %2913 = vrot.lane.b32.xlu1 %v2909_v42, %s6589_s12  ;;  %v3298_v47 = vmul.f32 %v3293_v28, %v6946_v59  ;;  %v3305_v42 = vcombine.high %v3297_v10, %v3297_v10 }
 0x11c   : > { %v7121_v33 = vpop.permute.xlu1 %1152  ;;  %v332_v21 = vpop.permute.xlu0 %331  ;;  %v3306_v51 = vcombine.high %v3298_v47, %v3298_v47 }
 0x11e   : > { %2917 = vrot.lane.b32.xlu0 %v2910_v0, %s6589_s12  ;;  %2911 = vrot.lane.b32.xlu1 %v2901_v7, %s6589_s12  ;;  %v502_v0 = vcombine.high %v282_v23, %v282_v23 }
 0x120   : > { %v7133_v3 = vpop.permute.xlu1 %714  ;;  %v7135_v6 = vpop.permute.xlu0 %935 }
 0x122   : > { %3092 = vrot.lane.b32.xlu0 %v3088_v36, %s6590_s13  ;;  %2919 = vrot.lane.b32.xlu1 %v2903_v50, %s6589_s12  ;;  %s6592_s12 = smov 48  }
 0x124   : > { %v7143_v20 = vpop.permute.xlu1 %1156  ;;  %v7145_v30 = vpop.permute.xlu0 %1373 }
 0x126   : > { %3090 = vrot.lane.b32.xlu0 %v6920_v35, %s6590_s13  ;;  %3094 = vrot.lane.b32.xlu1 %v6946_v59, %s6590_s13 }
 0x128   : > { %v7154_v54 = vpop.permute.xlu1 %1377  ;;  %v336_v7 = vpop.permute.xlu0 %335 }
 0x12a   : > { %3098 = vrot.lane.b32.xlu0 %v6903_v55, %s6590_s13  ;;  %3096 = vrot.lane.b32.xlu1 %v3089_v41, %s6590_s13  ;;  %v3299_v41 = vmul.f32 %v3289_v37, %v6903_v55  ;;  %s6594_s13 = smov 46  }
 0x12c   : > { %v7160_v12 = vpop.permute.xlu0 %939  ;;  %v334_v31 = vpop.permute.xlu1 %333 }
 0x12d   : > { %v343_v36 = vsel %vm341_vm14, %v334_v31, %v336_v7  ;;  %v342_v50 = vsel %vm341_vm14, %v332_v21, %v334_v31 }
 0x12e   : > { %3311 = vrot.lane.b32.xlu0 %v3298_v47, %s6591_s26  ;;  %3309 = vrot.lane.b32.xlu1 %v3305_v42, %s6591_s26  ;;  %v279_v47 = vcombine.low %v269_v8, %v273_v61  ;;  %v284_v42 = vld [vmem:[%s7872_s1] sm:$0xff] }
 0x12f   : > { %6114 = vmatprep.subr.msk.mxu0 %vm315_vm4, %v343_v36 }
 0x130   : > { %6115 = vmatpush1.msk.msra.mxu0 %vm315_vm4, %v342_v50  ;;  %v7178_v21 = vpop.permute.xlu0 %1154  ;;  %v7180_v48 = vpop.permute.xlu1 %718  ;;  %v283_v37 = vmul.f32 %v279_v47, %v6946_v59 }
 0x131   : > { %6116 = vmatmul.mubr.msk.f32.vlgmr.msra.gmra.mrb[0].mxu0 %vm346_vm15, %v6113_v34  ;;  %6120 = vmatprep.subr.msk.mxu0 %vm315_vm4, %v502_v0 }
 0x132   : > { %3313 = vrot.lane.b32.xlu0 %v3306_v51, %s6591_s26  ;;  %3307 = vrot.lane.b32.xlu1 %v3297_v10, %s6591_s26 }
 0x133   : > { %6121 = vmatpush1.msk.msra.mxu0 %vm315_vm4, %v282_v23  ;;  %579 = vmatprep.mubr.f32.mxu0 %v6580_v16 }
 0x134   : > { %v7191_v28 = vpop.permute.xlu0 %1375  ;;  %v938_v31 = vpop.permute.xlu1 %937 }
 0x136   : > { %3315 = vrot.lane.b32.xlu1 %v3299_v41, %s6591_s26  ;;  %v503_v41 = vcombine.high %v283_v37, %v283_v37 }
 0x138   : > { %v7196_v0 = vpop.permute.xlu0 %3513  ;;  %v7198_v17 = vpop.permute.xlu1 %1610 }
 0x139   : > { %v3517_v10 = vrot.slane %v7196_v0, 4  ;;  %6122 = vmatmul.mubr.msk.f32.vlgmr.msra.gmra.mrb[0].mxu0 %vm346_vm15, %v284_v42 }
 0x13a   : > { %804 = vmatprep.mubr.f32.mxu0 %v6580_v16 }
 0x13b   : > { %v3520_v23 = vsel %vm3519_vm0, %v3517_v10, %v7196_v0 }
 0x13c   : > { %v3526_v36 = vmul.f32 %v3520_v23, %v6920_v35  ;;  %v7207_v50 = vpop.permute.xlu0 %1827  ;;  %v338_v51 = vpop.permute.xlu1 %337  ;;  %v6126_v23 = vld [vmem:[%s7872_s1 + $0x10] sm:$0xff] }
 0x13d   : > { %v345_v8 = vsel %vm341_vm14, %v338_v51, %v7104_v56  ;;  %v344_v61 = vsel %vm341_vm14, %v336_v7, %v338_v51  ;;  %v946_v51 = vsel %vm945_vm2, %v7135_v6, %v938_v31  ;;  %v6133_v6 = vld [vmem:[%s7872_s1 + $0x18] sm:$0xff] }
 0x13e   : > { %v3534_v49 = vcombine.high %v3526_v36, %v3526_v36  ;;  %6117 = vmatprep.subr.msk.mxu1 %vm315_vm4, %v345_v8 }
 0x13f   : > { %6118 = vmatpush1.msk.msra.mxu1 %vm315_vm4, %v344_v61 }
 0x140   : > { %3538 = vrot.lane.b32.xlu0 %v3534_v49, %s6592_s12  ;;  %v717_v47 = vpop.permute.xlu0 %716  ;;  %6119 = vmatmul.mubr.msk.f32.vlgmr.msra.gmra.mrb[0].mxu1 %vm346_vm15, %v6113_v34  ;;  %v7216_v0 = vpop.permute.xlu1 %1606  ;;  %v947_v34 = vsel %vm945_vm2, %v938_v31, %v7160_v12  ;;  %v1163_v31 = vsel %vm1162_vm3, %v7121_v33, %v7178_v21 }
 0x141   : > { %v725_v56 = vsel %vm724_vm1, %v7133_v3, %v717_v47  ;;  %v726_v7 = vsel %vm724_vm1, %v717_v47, %v7180_v48  ;;  %6123 = vmatprep.subr.msk.mxu1 %vm315_vm4, %v503_v41  ;;  %650 = vmatprep.mubr.f32.mxu1 %v6580_v16 }
 0x142   : > { %6127 = vmatprep.subr.msk.mxu0 %vm315_vm4, %v726_v7  ;;  %6124 = vmatpush1.msk.msra.mxu1 %vm315_vm4, %v283_v37  ;;  %v1164_v37 = vsel %vm1162_vm3, %v7178_v21, %v7143_v20  ;;  %v1385_v7 = vsel %vm1383_vm5, %v7191_v28, %v7154_v54 }
 0x143   : > { %6128 = vmatpush1.msk.msra.mxu0 %vm315_vm4, %v725_v56 }
 0x144   : > { %3536 = vrot.lane.b32.xlu0 %v3526_v36, %s6592_s12  ;;  %v1159_v3 = vpop.permute.xlu0 %1158  ;;  %v7231_v49 = vpop.permute.xlu1 %1614  ;;  %6129 = vmatmul.mubr.msk.f32.vlgmr.msra.gmra.mrb[0].mxu0 %vm346_vm15, %v6126_v23 }
 0x145   : > { %6134 = vmatprep.subr.msk.mxu0 %vm315_vm4, %v947_v34  ;;  %1025 = vmatprep.mubr.f32.mxu0 %v6580_v16 }
 0x146   : > { %6135 = vmatpush1.msk.msra.mxu0 %vm315_vm4, %v946_v51 }
 0x147   : > { %6141 = vmatprep.subr.msk.mxu0 %vm315_vm4, %v1164_v37 }
 0x148   : > { %v1609_v36 = vpop.permute.xlu0 %1608  ;;  %6125 = vmatmul.mubr.msk.f32.vlgmr.msra.gmra.mrb[0].mxu1 %vm346_vm15, %v284_v42  ;;  %v7246_v8 = vpop.permute.xlu1 %1825 }
 0x149   : > { %875 = vmatprep.mubr.f32.mxu1 %v6580_v16 }
 0x14c   : > { %v721_v61 = vpop.permute.xlu0 %720  ;;  %v3516_v41 = vpop.permute.xlu1 %3515  ;;  %6136 = vmatmul.mubr.msk.f32.vlgmr.msra.gmra.mrb[0].mxu0 %vm346_vm15, %v6133_v6 }
 0x14d   : > { %v727_v42 = vsel %vm724_vm1, %v7180_v48, %v721_v61  ;;  %v728_v47 = vsel %vm724_vm1, %v721_v61, %v7116_v32  ;;  %v3518_v56 = vrot.slane %v3516_v41, 4  ;;  %6142 = vmatpush1.msk.msra.mxu0 %vm315_vm4, %v1163_v31  ;;  %1242 = vmatprep.mubr.f32.mxu0 %v6580_v16 }
 0x14e   : > { %6148 = vmatprep.subr.msk.mxu0 %vm315_vm4, %v1385_v7  ;;  %6130 = vmatprep.subr.msk.mxu1 %vm315_vm4, %v728_v47 }
 0x14f   : > { %v3521_v33 = vsel %vm315_vm4, %v3517_v10, %v3518_v56  ;;  %v3528_v21 = vmul.f32 %v3518_v56, %v6903_v55  ;;  %6131 = vmatpush1.msk.msra.mxu1 %vm315_vm4, %v727_v42  ;;  %v6140_v10 = vld [vmem:[%s7872_s1 + $0x20] sm:$0xff]  ;;  %v6147_v56 = vld [vmem:[%s7872_s1 + $0x28] sm:$0xff] }
 0x150   : > { %v3522_v32 = vsel %vm3519_vm0, %v3521_v33, %v3516_v41  ;;  %v7271_v48 = vpop.permute.xlu0 %1823  ;;  %6132 = vmatmul.mubr.msk.f32.vlgmr.msra.gmra.mrb[0].mxu1 %vm346_vm15, %v6126_v23  ;;  %v942_v34 = vpop.permute.xlu1 %941  ;;  %v1166_v23 = vsel %vm1162_vm3, %v1159_v3, %v7112_v45  ;;  %v1618_v41 = vsel %vm1616_vm6, %v1609_v36, %v7198_v17  ;;  %v1165_v45 = vsel %vm1162_vm3, %v7143_v20, %v1159_v3 }
 0x151   : > { %v3527_v51 = vmul.f32 %v3522_v32, %v6946_v59  ;;  %v948_v37 = vsel %vm945_vm2, %v7160_v12, %v942_v34  ;;  %v949_v31 = vsel %vm945_vm2, %v942_v34, %v7110_v53  ;;  %3544 = vrot.lane.b32.xlu0 %v3528_v21, %s6592_s12  ;;  %1096 = vmatprep.mubr.f32.mxu1 %v6580_v16  ;;  %vm3100_vm0 = vcmask 449536  }
 0x152   : > { %6137 = vmatprep.subr.msk.mxu1 %vm315_vm4, %v949_v31  ;;  %v1384_v53 = vsel %vm1383_vm5, %v7145_v30, %v7191_v28  ;;  %v1617_v20 = vsel %vm1616_vm6, %v7216_v0, %v1609_v36 }
 0x153   : > { %3540 = vrot.lane.b32.xlu1 %v3527_v51, %s6592_s12  ;;  %6138 = vmatpush1.msk.msra.mxu1 %vm315_vm4, %v948_v37  ;;  %v3535_v42 = vcombine.high %v3527_v51, %v3527_v51 }
 0x154   : > { %v7292_v12 = vpop.permute.xlu0 %1831  ;;  %6144 = vmatprep.subr.msk.mxu1 %vm315_vm4, %v1166_v23  ;;  %v1380_v61 = vpop.permute.xlu1 %1379  ;;  %6143 = vmatmul.mubr.msk.f32.vlgmr.msra.gmra.mrb[0].mxu0 %vm346_vm15, %v6140_v10 }
 0x155   : > { %6149 = vmatpush1.msk.msra.mxu0 %vm315_vm4, %v1384_v53  ;;  %1463 = vmatprep.mubr.f32.mxu0 %v6580_v16  ;;  %v1387_v47 = vsel %vm1383_vm5, %v1380_v61, %v7118_v11  ;;  %v1835_v11 = vsel %vm1833_vm7, %v7246_v8, %v7207_v50  ;;  %v1386_v36 = vsel %vm1383_vm5, %v7154_v54, %v1380_v61  ;;  %v6154_v53 = vld [vmem:[%s7872_s1 + $0x30] sm:$0xff] }
 0x156   : > { %6155 = vmatprep.subr.msk.mxu0 %vm315_vm4, %v1618_v41 }
 0x157   : > { %3542 = vrot.lane.b32.xlu1 %v3535_v42, %s6592_s12 }
 0x158   : > { %v7304_v30 = vpop.permute.xlu0 %2046  ;;  %6139 = vmatmul.mubr.msk.f32.vlgmr.msra.gmra.mrb[0].mxu1 %vm346_vm15, %v6133_v6  ;;  %v7307_v28 = vpop.permute.xlu1 %1829 }
 0x159   : > { %6145 = vmatpush1.msk.msra.mxu1 %vm315_vm4, %v1165_v45  ;;  %1313 = vmatprep.mubr.f32.mxu1 %v6580_v16 }
 0x15a   : > { %6151 = vmatprep.subr.msk.mxu1 %vm315_vm4, %v1387_v47  ;;  %v1837_v47 = vsel %vm1833_vm7, %v7307_v28, %v7292_v12 }
 0x15c   : > { %v3733_v3 = vpop.permute.xlu0 %3732  ;;  %v3731_v6 = vpop.permute.xlu1 %3730  ;;  %6150 = vmatmul.mubr.msk.f32.vlgmr.msra.gmra.mrb[0].mxu0 %vm346_vm15, %v6147_v56 }
 0x15d   : > { %v3735_v7 = vrot.slane %v3733_v3, 4  ;;  %v3734_v33 = vrot.slane %v3731_v6, 4  ;;  %6156 = vmatpush1.msk.msra.mxu0 %vm315_vm4, %v1617_v20  ;;  %1696 = vmatprep.mubr.f32.mxu0 %v6580_v16 }
 0x15e   : > { %6162 = vmatprep.subr.msk.mxu0 %vm315_vm4, %v1835_v11 }
 0x15f   : > { %v3737_v21 = vsel %vm3736_vm8, %v3734_v33, %v3731_v6  ;;  %v3738_v0 = vsel %vm315_vm4, %v3734_v33, %v3735_v7 }
 0x160   : > { %v3739_v32 = vsel %vm3736_vm8, %v3738_v0, %v3733_v3  ;;  %v3743_v34 = vmul.f32 %v3737_v21, %v6920_v35  ;;  %v1613_v51 = vpop.permute.xlu0 %1612  ;;  %6146 = vmatmul.mubr.msk.f32.vlgmr.msra.gmra.mrb[0].mxu1 %vm346_vm15, %v6140_v10  ;;  %v7331_v37 = vpop.permute.xlu1 %2048  ;;  %v1834_v10 = vsel %vm1833_vm7, %v7271_v48, %v7246_v8  ;;  %v6161_v3 = vld [vmem:[%s7872_s1 + $0x38] sm:$0xff]  ;;  %vm3317_vm8 = vcmask 441344  }
 0x161   : > { %v3744_v31 = vmul.f32 %v3739_v32, %v6946_v59  ;;  %v1620_v23 = vsel %vm1616_vm6, %v1613_v51, %v7231_v49  ;;  %6152 = vmatpush1.msk.msra.mxu1 %vm315_vm4, %v1386_v36  ;;  %1534 = vmatprep.mubr.f32.mxu1 %v6580_v16  ;;  %v2056_v41 = vsel %vm2054_vm10, %v7304_v30, %v7331_v37  ;;  %v6168_v32 = vld [vmem:[%s7872_s1 + $0x40] sm:$0xff] }
 0x162   : > { %v3751_v54 = vcombine.high %v3743_v34, %v3743_v34  ;;  %6158 = vmatprep.subr.msk.mxu1 %vm315_vm4, %v1620_v23  ;;  %v1619_v8 = vsel %vm1616_vm6, %v7198_v17, %v1613_v51  ;;  %v3745_v17 = vmul.f32 %v3735_v7, %v6903_v55 }
 0x163   : > { %3757 = vrot.lane.b32.xlu0 %v3744_v31, %s6593_s10  ;;  %v3752_v42 = vcombine.high %v3744_v31, %v3744_v31 }
 0x164   : > { %v2051_v61 = vpop.permute.xlu0 %2050  ;;  %3755 = vrot.lane.b32.xlu1 %v3751_v54, %s6593_s10  ;;  %v2045_v49 = vpop.permute.xlu1 %2044  ;;  %6157 = vmatmul.mubr.msk.f32.vlgmr.msra.gmra.mrb[0].mxu0 %vm346_vm15, %v6154_v53 }
 0x165   : > { %6163 = vmatpush1.msk.msra.mxu0 %vm315_vm4, %v1834_v10  ;;  %1913 = vmatprep.mubr.f32.mxu0 %v6580_v16  ;;  %v2055_v6 = vsel %vm2054_vm10, %v2045_v49, %v7304_v30  ;;  %v1836_v30 = vsel %vm1833_vm7, %v7207_v50, %v7307_v28  ;;  %v2057_v10 = vsel %vm2054_vm10, %v7331_v37, %v2051_v61 }
 0x166   : > { %6169 = vmatprep.subr.msk.mxu0 %vm315_vm4, %v2056_v41 }
 0x167   : > { %3759 = vrot.lane.b32.xlu0 %v3752_v42, %s6593_s10 }
 0x168   : > { %v3948_v48 = vpop.permute.xlu0 %3947  ;;  %6153 = vmatmul.mubr.msk.f32.vlgmr.msra.gmra.mrb[0].mxu1 %vm346_vm15, %v6147_v56  ;;  %3753 = vrot.lane.b32.xlu1 %v3743_v34, %s6593_s10  ;;  %v2053_v45 = vpop.permute.xlu1 %2052 }
 0x169   : > { %v3951_v20 = vrot.slane %v3948_v48, 4  ;;  %6159 = vmatpush1.msk.msra.mxu1 %vm315_vm4, %v1619_v8  ;;  %1767 = vmatprep.mubr.f32.mxu1 %v6580_v16  ;;  %v2058_v0 = vsel %vm2054_vm10, %v2051_v61, %v2053_v45  ;;  %v6175_v45 = vld [vmem:[%s7872_s1 + $0x48] sm:$0xff] }
 0x16a   : > { %6165 = vmatprep.subr.msk.mxu1 %vm315_vm4, %v1837_v47 }
 0x16b   : > { %v3954_v56 = vsel %vm3953_vm11, %v3951_v20, %v3948_v48 }
 0x16c   : > { %v3960_v12 = vmul.f32 %v3954_v56, %v6920_v35  ;;  %v2266_v11 = vpop.permute.xlu0 %2265  ;;  %3761 = vrot.lane.b32.xlu1 %v3745_v17, %s6593_s10  ;;  %v2264_v33 = vpop.permute.xlu1 %2263  ;;  %6164 = vmatmul.mubr.msk.f32.vlgmr.msra.gmra.mrb[0].mxu0 %vm346_vm15, %v6161_v3  ;;  %s6111_s10 = sshll.u32 %s215_s9, 5 }
 0x16d   : > { %v2272_v21 = vsel %vm2244_vm9, %v2264_v33, %v2266_v11  ;;  %6170 = vmatpush1.msk.msra.mxu0 %vm315_vm4, %v2055_v6  ;;  %2134 = vmatprep.mubr.f32.mxu0 %v6580_v16  ;;  %v6182_v6 = vld [vmem:[%s7872_s1 + $0x50] sm:$0xff]  ;;  %s217_s30 = scalar_lea.vmem [#allocation2], %s6111_s10 }
 0x16e   : > { %v3968_v55 = vcombine.high %v3960_v12, %v3960_v12  ;;  %6176 = vmatprep.subr.msk.mxu0 %vm315_vm4, %v2272_v21 }
 0x170   : > { %v2262_v7 = vpop.permute.xlu0 %2261  ;;  %6160 = vmatmul.mubr.msk.f32.vlgmr.msra.gmra.mrb[0].mxu1 %vm346_vm15, %v6154_v53  ;;  %3972 = vrot.lane.b32.xlu0 %v3968_v55, %s6594_s13  ;;  %v3950_v35 = vpop.permute.xlu1 %3949  ;;  %v7395_v53 = vld [vmem:[%s6898_s14 + $0x10] sm:$0xff]  ;;  %v7445_v55 = vld [vmem:[%s6898_s14 + $0x8] sm:$0xff] }
 0x171   : > { %6166 = vmatpush1.msk.msra.mxu1 %vm315_vm4, %v1836_v30  ;;  %v3952_v36 = vrot.slane %v3950_v35, 4  ;;  %1984 = vmatprep.mubr.f32.mxu1 %v6580_v16  ;;  %v2271_v28 = vsel %vm2244_vm9, %v2262_v7, %v2264_v33 }
 0x172   : > { %6172 = vmatprep.subr.msk.mxu1 %vm315_vm4, %v2058_v0 }
 0x173   : > { %v3955_v50 = vsel %vm315_vm4, %v3951_v20, %v3952_v36  ;;  %v3962_v54 = vmul.f32 %v7395_v53, %v3952_v36  ;;  %v7420_v20 = vld [vmem:[%s6898_s14] sm:$0xff]  ;;  %v6189_v36 = vld [vmem:[%s7872_s1 + $0x58] sm:$0xff]  ;;  %s6048_s14 = sshll.u32 %s217_s30, 4  ;;  %s7831_s14 = int_to_ptr.vmem [resolvable:$true] %s6048_s14 }
 0x174   : > { %v3956_v34 = vsel %vm3953_vm11, %v3955_v50, %v3950_v35  ;;  %v2270_v51 = vpop.permute.xlu0 %2269  ;;  %3970 = vrot.lane.b32.xlu0 %v3960_v12, %s6594_s13  ;;  %v2268_v31 = vpop.permute.xlu1 %2267  ;;  %6171 = vmatmul.mubr.msk.f32.vlgmr.msra.gmra.mrb[0].mxu0 %vm346_vm15, %v6168_v32  ;;  %vm3546_vm11 = vcmask 392192  }
 0x175   : > { %v3961_v23 = vmul.f32 %v3956_v34, %v6946_v59  ;;  %6177 = vmatpush1.msk.msra.mxu0 %vm315_vm4, %v2271_v28  ;;  %2350 = vmatprep.mubr.f32.mxu0 %v6580_v16  ;;  %v2274_v8 = vsel %vm2244_vm9, %v2268_v31, %v2270_v51 }
 0x177   : > { %3974 = vrot.lane.b32.xlu1 %v3961_v23, %s6594_s13  ;;  %v3969_v42 = vcombine.high %v3961_v23, %v3961_v23 }
 0x178   : > { %v2482_v49 = vpop.permute.xlu0 %2481  ;;  %6167 = vmatmul.mubr.msk.f32.vlgmr.msra.gmra.mrb[0].mxu1 %vm346_vm15, %v6161_v3  ;;  %3978 = vrot.lane.b32.xlu0 %v3962_v54, %s6594_s13  ;;  %v2480_v41 = vpop.permute.xlu1 %2479  ;;  %v2273_v3 = vsel %vm2244_vm9, %v2266_v11, %v2268_v31  ;;  %vm2704_vm9 = vcmask 506880   ;;  %v6196_v54 = vld [vmem:[%s7872_s1 + $0x60] sm:$0xff] }
 0x179   : > { %6173 = vmatpush1.msk.msra.mxu1 %vm315_vm4, %v2057_v10  ;;  %v2489_v48 = vsel %vm2487_vm12, %v2480_v41, %v2482_v49  ;;  %2205 = vmatprep.mubr.f32.mxu1 %v6580_v16 }
 0x17a   : > { %6179 = vmatprep.subr.msk.mxu1 %vm315_vm4, %v2274_v8  ;;  %6183 = vmatprep.subr.msk.mxu0 %vm315_vm4, %v2489_v48 }
 0x17b   : > { %3976 = vrot.lane.b32.xlu1 %v3969_v42, %s6594_s13  ;;  %s7829_s13 = scalar_lea.hbm %s7876_s5, %s6306_s11 }
 0x17c   : > { %v2484_v37 = vpop.permute.xlu0 %2483  ;;  %v2478_v61 = vpop.permute.xlu1 %2477  ;;  %6178 = vmatmul.mubr.msk.f32.vlgmr.msra.gmra.mrb[0].mxu0 %vm346_vm15, %v6175_v45  ;;  %4360 = vrot.lane.b32.xlu0 %v6946_v59, %s6575_s15 }
 0x17d   : > { %v2488_v47 = vsel %vm2487_vm12, %v2478_v61, %v2480_v41  ;;  %2567 = vmatprep.mubr.f32.mxu0 %v6580_v16  ;;  %v2490_v30 = vsel %vm2487_vm12, %v2482_v49, %v2484_v37  ;;  %v6203_v61 = vld [vmem:[%s7872_s1 + $0x68] sm:$0xff] }
 0x17e   : > { %6184 = vmatpush1.msk.msra.mxu0 %vm315_vm4, %v2488_v47 }
 0x17f   : > { %4358 = vrot.lane.b32.xlu1 %v7420_v20, %s6575_s15 }
 0x180   : > { %v2697_v17 = vpop.permute.xlu0 %2696  ;;  %6174 = vmatmul.mubr.msk.f32.vlgmr.msra.gmra.mrb[0].mxu1 %vm346_vm15, %v6168_v32  ;;  %v2486_v56 = vpop.permute.xlu1 %2485  ;;  %4566 = vrot.lane.b32.xlu0 %v7420_v20, %s6578_s23 }
 0x181   : > { %6180 = vmatpush1.msk.msra.mxu1 %vm315_vm4, %v2273_v3  ;;  %v2491_v59 = vsel %vm2487_vm12, %v2484_v37, %v2486_v56  ;;  %2421 = vmatprep.mubr.f32.mxu1 %v6580_v16  ;;  %vm3763_vm12 = vcmask 384000  }
 0x182   : > { %6186 = vmatprep.subr.msk.mxu1 %vm315_vm4, %v2491_v59 }
 0x183   : > { %4362 = vrot.lane.b32.xlu1 %v7395_v53, %s6575_s15 }
 0x184   : > { %v2695_v12 = vpop.permute.xlu0 %2694  ;;  %v2699_v11 = vpop.permute.xlu1 %2698  ;;  %4570 = vrot.lane.b32.xlu0 %v7395_v53, %s6578_s23  ;;  %6185 = vmatmul.mubr.msk.f32.vlgmr.msra.gmra.mrb[0].mxu0 %vm346_vm15, %v6182_v6 }
 0x185   : > { %v2705_v33 = vsel %vm2704_vm9, %v2695_v12, %v2697_v17  ;;  %v2706_v21 = vsel %vm2704_vm9, %v2697_v17, %v2699_v11  ;;  %2784 = vmatprep.mubr.f32.mxu0 %v6580_v16 }
 0x186   : > { %6190 = vmatprep.subr.msk.mxu0 %vm315_vm4, %v2706_v21 }
 0x187   : > { %4568 = vrot.lane.b32.xlu1 %v7445_v55, %s6578_s23  ;;  %6191 = vmatpush1.msk.msra.mxu0 %vm315_vm4, %v2705_v33  ;;  %v6210_v33 = vld [vmem:[%s7872_s1 + $0x70] sm:$0xff] }
 0x188   : > { %v2703_v7 = vpop.permute.xlu0 %2702  ;;  %6181 = vmatmul.mubr.msk.f32.vlgmr.msra.gmra.mrb[0].mxu1 %vm346_vm15, %v6175_v45  ;;  %v2701_v35 = vpop.permute.xlu1 %2700  ;;  %4772 = vrot.lane.b32.xlu0 %v7445_v55, %s6576_s16 }
 0x189   : > { %6187 = vmatpush1.msk.msra.mxu1 %vm315_vm4, %v2490_v30  ;;  %v2708_v0 = vsel %vm2704_vm9, %v2701_v35, %v2703_v7  ;;  %2638 = vmatprep.mubr.f32.mxu1 %v6580_v16  ;;  %v2707_v34 = vsel %vm2704_vm9, %v2699_v11, %v2701_v35  ;;  %vm3980_vm9 = vcmask 375808  }
 0x18a   : > { %6193 = vmatprep.subr.msk.mxu1 %vm315_vm4, %v2708_v0 }
 0x18b   : > { %4770 = vrot.lane.b32.xlu1 %v7420_v20, %s6576_s16 }
 0x18c   : > { %v2916_v32 = vpop.permute.xlu0 %2915  ;;  %v2914_v50 = vpop.permute.xlu1 %2913  ;;  %4974 = vrot.lane.b32.xlu0 %v7420_v20, %s6577_s17  ;;  %6192 = vmatmul.mubr.msk.f32.vlgmr.msra.gmra.mrb[0].mxu0 %vm346_vm15, %v6189_v36 }
 0x18d   : > { %v2923_v28 = vsel %vm2921_vm13, %v2914_v50, %v2916_v32  ;;  %3001 = vmatprep.mubr.f32.mxu0 %v6580_v16 }
 0x18e   : > { %6197 = vmatprep.subr.msk.mxu0 %vm315_vm4, %v2923_v28 }
 0x18f   : > { %4774 = vrot.lane.b32.xlu1 %v7395_v53, %s6576_s16  ;;  %s6498_s16 = scalar_lea.vmem %s7831_s14, 512 }
 0x190   : > { %v2918_v51 = vpop.permute.xlu0 %2917  ;;  %6188 = vmatmul.mubr.msk.f32.vlgmr.msra.gmra.mrb[0].mxu1 %vm346_vm15, %v6182_v6  ;;  %v2912_v31 = vpop.permute.xlu1 %2911  ;;  %4978 = vrot.lane.b32.xlu0 %v7395_v53, %s6577_s17  ;;  %p6499_p11 = scmp.ne.s32.totalorder %s7831_s14, %s6498_s16 }
 0x191   : > { %6194 = vmatpush1.msk.msra.mxu1 %vm315_vm4, %v2707_v34  ;;  %v2922_v23 = vsel %vm2921_vm13, %v2912_v31, %v2914_v50  ;;  %2855 = vmatprep.mubr.f32.mxu1 %v6580_v16  ;;  %v2924_v42 = vsel %vm2921_vm13, %v2916_v32, %v2918_v51  ;;  %v6217_v34 = vld [vmem:[%s7872_s1 + $0x78] sm:$0xff] }
 0x192   : > { %6198 = vmatpush1.msk.msra.mxu0 %vm315_vm4, %v2922_v23  ;;  %p6500_p12 = pnand %p6499_p11, %p6665_p5 }
 0x193   : > { %4976 = vrot.lane.b32.xlu1 %v7445_v55, %s6577_s17  ;;  %s6596_s17 = smov [#allocation2]  }
 0x194   : > { %v3093_v10 = vpop.permute.xlu0 %3092  ;;  %v2920_v49 = vpop.permute.xlu1 %2919  ;;  %5180 = vrot.lane.b32.xlu0 %v7445_v55, %s6579_s25  ;;  %6199 = vmatmul.mubr.msk.f32.vlgmr.msra.gmra.mrb[0].mxu0 %vm346_vm15, %v6196_v54  ;;  %p6501_p13 = pneg %p6500_p12 }
 0x195   : > { %v2925_v41 = vsel %vm2921_vm13, %v2918_v51, %v2920_v49  ;;  %3180 = vmatprep.mubr.f32.mxu0 %v6580_v16 }
 0x196   : > { %6200 = vmatprep.subr.msk.mxu1 %vm315_vm4, %v2925_v41 }
 0x197   : > { %5178 = vrot.lane.b32.xlu1 %v7420_v20, %s6579_s25 }
 0x198   : > { %v3091_v8 = vpop.permute.xlu0 %3090  ;;  %6195 = vmatmul.mubr.msk.f32.vlgmr.msra.gmra.mrb[0].mxu1 %vm346_vm15, %v6189_v36  ;;  %v3095_v48 = vpop.permute.xlu1 %3094  ;;  %5386 = vrot.lane.b32.xlu0 %v7420_v20, %s6582_s6 }
 0x199   : > { %v3101_v45 = vsel %vm3100_vm0, %v3091_v8, %v3093_v10  ;;  %6201 = vmatpush1.msk.msra.mxu1 %vm315_vm4, %v2924_v42  ;;  %v3102_v37 = vsel %vm3100_vm0, %v3093_v10, %v3095_v48  ;;  %3072 = vmatprep.mubr.f32.mxu1 %v6580_v16  ;;  %v7562_v8 = vsub.s32 1, %v6705_v9 }
 0x19a   : > { %6204 = vmatprep.subr.msk.mxu0 %vm315_vm4, %v3102_v37 }
 0x19b   : > { %5182 = vrot.lane.b32.xlu1 %v7395_v53, %s6579_s25  ;;  %6205 = vmatpush1.msk.msra.mxu0 %vm315_vm4, %v3101_v45  ;;  %v4143_v45 = vmul.f32 %v6985_v43, %v6819_v2  ;;  %s6502_s25 = sshll.u32 %s6596_s17, 4  ;;  %s6503_s25 = int_to_ptr.vmem [resolvable:$false] %s6502_s25 }
 0x19c   : > { %v3099_v47 = vpop.permute.xlu0 %3098  ;;  %v3097_v3 = vpop.permute.xlu1 %3096  ;;  %5390 = vrot.lane.b32.xlu0 %v7395_v53, %s6582_s6  ;;  %6206 = vmatmul.mubr.msk.f32.vlgmr.msra.gmra.mrb[0].mxu0 %vm346_vm15, %v6203_v61  ;;  %p6505_p0 = scmp.lt.s32.totalorder %s7831_s14, %s6503_s25 }
 0x19d   : > { %v3104_v17 = vsel %vm3100_vm0, %v3097_v3, %v3099_v47  ;;  %3397 = vmatprep.mubr.f32.mxu0 %v6580_v16  ;;  %v3103_v56 = vsel %vm3100_vm0, %v3095_v48, %v3097_v3  ;;  %v4142_v48 = vmul.f32 %v6979_v38, %v6816_v63 }
 0x19e   : > { %6207 = vmatprep.subr.msk.mxu1 %vm315_vm4, %v3104_v17  ;;  %v4153_v17 = vrot.slane %v4143_v45, %v7562_v8 }
 0x19f   : > { %5388 = vrot.lane.b32.xlu1 %v7445_v55, %s6582_s6  ;;  %v4149_v9 = vrot.slane %v4142_v48, %v7562_v8  ;;  %s6504_s6 = scalar_lea.vmem %s6503_s25, 1024 }
 0x1a0   : > { %v3312_v59 = vpop.permute.xlu0 %3311  ;;  %v3310_v6 = vpop.permute.xlu1 %3309  ;;  %6202 = vmatmul.mubr.msk.f32.vlgmr.msra.gmra.mrb[0].mxu1 %vm346_vm15, %v6196_v54  ;;  %5592 = vrot.lane.b32.xlu0 %v7445_v55, %s6583_s7  ;;  %p6506_p1 = scmp.lt.s32.totalorder %s6504_s6, %s6498_s16 }
 0x1a1   : > { %v3319_v12 = vsel %vm3317_vm8, %v3310_v6, %v3312_v59  ;;  %6208 = vmatpush1.msk.msra.mxu1 %vm315_vm4, %v3103_v56  ;;  %3251 = vmatprep.mubr.f32.mxu1 %v6580_v16  ;;  %v4144_v56 = vmul.f32 %v7024_v25, %v6780_v44 }
 0x1a2   : > { %6211 = vmatprep.subr.msk.mxu0 %vm315_vm4, %v3319_v12  ;;  %v4162_v12 = vrot.slane %v7420_v20, 4  ;;  %p6507_p2 = por %p6506_p1, %p6505_p0 }
 0x1a3   : > { %5590 = vrot.lane.b32.xlu1 %v7420_v20, %s6583_s7 }
 0x1a4   : > { %v3308_v11 = vpop.permute.xlu1 %3307  ;;  %5794 = vrot.lane.b32.xlu0 %v7420_v20, %s6584_s8  ;;  %v3314_v30 = vpop.permute.xlu0 %3313  ;;  %p6508_p3 = pnand %p6507_p2, %p6501_p13 }
 0x1a5   : > { %v3318_v21 = vsel %vm3317_vm8, %v3308_v11, %v3310_v6  ;;  %v3320_v0 = vsel %vm3317_vm8, %v3312_v59, %v3314_v30  ;;  %v4145_v59 = vmul.f32 %v7027_v29, %v6805_v57  ;;  %v4163_v11 = vrot.slane %v7445_v55, 4 }
 0x1a6   : > { %6212 = vmatpush1.msk.msra.mxu0 %vm315_vm4, %v3318_v21 }
 0x1a7   : > { %5594 = vrot.lane.b32.xlu1 %v7395_v53, %s6583_s7  ;;  %6213 = vmatmul.mubr.msk.f32.vlgmr.msra.gmra.mrb[0].mxu0 %vm346_vm15, %v6210_v33  ;;  %v4165_v20 = vsel %vm315_vm4, %v4162_v12, %v4163_v11 }
 0x1a8   : > { %v3316_v7 = vpop.permute.xlu1 %3315  ;;  %6209 = vmatmul.mubr.msk.f32.vlgmr.msra.gmra.mrb[0].mxu1 %vm346_vm15, %v6203_v61  ;;  %5798 = vrot.lane.b32.xlu0 %v7395_v53, %s6584_s8  ;;  %v6224_v61 = vld [vmem:[%s7872_s1 + $0x80] sm:$0xff] }
 0x1a9   : > { %v3321_v35 = vsel %vm3317_vm8, %v3314_v30, %v3316_v7  ;;  %3468 = vmatprep.mubr.f32.mxu1 %v6580_v16  ;;  %3626 = vmatprep.mubr.f32.mxu0 %v6580_v16  ;;  %v4173_v30 = vcombine.low %v4149_v9, %v4153_v17  ;;  %v4157_v7 = vrot.slane %v4144_v56, %v7562_v8 }
 0x1aa   : > { %6214 = vmatprep.subr.msk.mxu1 %vm315_vm4, %v3321_v35  ;;  %v4161_v35 = vrot.slane %v4145_v59, %v7562_v8  ;;  %v4547_v17 = vmul.f32 %v6985_v43, %v6768_v39  ;;  %v4548_v56 = vmul.f32 %v7024_v25, %v6691_v4  ;;  %v4549_v59 = vmul.f32 %v7027_v29, %v6694_v5 }
 0x1ab   : > { %6215 = vmatpush1.msk.msra.mxu1 %vm315_vm4, %v3320_v0  ;;  %5796 = vrot.lane.b32.xlu1 %v7445_v55, %s6584_s8  ;;  %v4164_v55 = vrot.slane %v7395_v53, 4 }
 0x1b0   : > { %6216 = vmatmul.mubr.msk.f32.vlgmr.msra.gmra.mrb[0].mxu1 %vm346_vm15, %v6210_v33 }
 0x1b1   : > { %3697 = vmatprep.mubr.f32.mxu1 %v6580_v16 }
 0x1b2   : > { %v3539_v36 = vpop.permute.xlu0 %3538 }
 0x1b6   : > { %v3537_v32 = vpop.permute.xlu0 %3536 }
 0x1b7   : > { %v3547_v51 = vsel %vm3546_vm11, %v3537_v32, %v3539_v36  ;;  %v4174_v32 = vcombine.low %v4157_v7, %v4161_v35 }
 0x1c3   : > { %v3545_v31 = vpop.permute.xlu0 %3544 }
 0x1c5   : > { %v3541_v50 = vpop.permute.xlu1 %3540 }
 0x1c6   : > { %v3548_v28 = vsel %vm3546_vm11, %v3539_v36, %v3541_v50  ;;  %v4177_v36 = vmul.f32 %v4173_v30, %v4165_v20 }
 0x1c7   : > { %6218 = vmatprep.subr.msk.mxu0 %vm315_vm4, %v3548_v28  ;;  %v4166_v28 = vsel %vm315_vm4, %v4163_v11, %v4164_v55 }
 0x1c8   : > { %6219 = vmatpush1.msk.msra.mxu0 %vm315_vm4, %v3547_v51  ;;  %v4183_v51 = vcombine.high %v4177_v36, %v4177_v36 }
 0x1c9   : > { %v3543_v23 = vpop.permute.xlu1 %3542  ;;  %6220 = vmatmul.mubr.msk.f32.vlgmr.msra.gmra.mrb[0].mxu0 %vm346_vm15, %v6217_v34 }
 0x1ca   : > { %v3549_v54 = vsel %vm3546_vm11, %v3541_v50, %v3543_v23  ;;  %v3550_v10 = vsel %vm3546_vm11, %v3543_v23, %v3545_v31  ;;  %3843 = vmatprep.mubr.f32.mxu0 %v6580_v16  ;;  %v4178_v31 = vmul.f32 %v4174_v32, %v4166_v28 }
 0x1cb   : > { %6221 = vmatprep.subr.msk.mxu1 %vm315_vm4, %v3550_v10  ;;  %v6231_v10 = vld [vmem:[%s7872_s1 + $0x88] sm:$0xff] }
 0x1cc   : > { %6222 = vmatpush1.msk.msra.mxu1 %vm315_vm4, %v3549_v54 }
 0x1cd   : > { %6223 = vmatmul.mubr.msk.f32.vlgmr.msra.gmra.mrb[0].mxu1 %vm346_vm15, %v6217_v34 }
 0x1ce   : > { %3914 = vmatprep.mubr.f32.mxu1 %v6580_v16 }
 0x1d5   : > { %v3758_v49 = vpop.permute.xlu0 %3757 }
 0x1d6   : > { %v3756_v41 = vpop.permute.xlu1 %3755 }
 0x1d7   : > { %v3765_v42 = vsel %vm3763_vm12, %v3756_v41, %v3758_v49 }
 0x1d8   : > { %6225 = vmatprep.subr.msk.mxu0 %vm315_vm4, %v3765_v42  ;;  %v4184_v42 = vcombine.high %v4178_v31, %v4178_v31 }
 0x1d9   : > { %v3760_v3 = vpop.permute.xlu0 %3759 }
 0x1da   : > { %v3754_v37 = vpop.permute.xlu1 %3753  ;;  %v3766_v21 = vsel %vm3763_vm12, %v3758_v49, %v3760_v3 }
 0x1db   : > { %v3764_v47 = vsel %vm3763_vm12, %v3754_v37, %v3756_v41  ;;  %v4345_v41 = vrot.slane %v6979_v38, %v7562_v8 }
 0x1dc   : > { %6226 = vmatpush1.msk.msra.mxu0 %vm315_vm4, %v3764_v47 }
 0x1dd   : > { %6227 = vmatmul.mubr.msk.f32.vlgmr.msra.gmra.mrb[0].mxu0 %vm346_vm15, %v6224_v61 }
 0x1de   : > { %v3762_v6 = vpop.permute.xlu1 %3761  ;;  %4060 = vmatprep.mubr.f32.mxu0 %v6580_v16 }
 0x1df   : > { %v3767_v33 = vsel %vm3763_vm12, %v3760_v3, %v3762_v6  ;;  %v4546_v3 = vmul.f32 %v6979_v38, %v6745_v24  ;;  %v4353_v24 = vrot.slane %v7024_v25, %v7562_v8  ;;  %v4357_v38 = vrot.slane %v7027_v29, %v7562_v8 }
 0x1e0   : > { %6228 = vmatprep.subr.msk.mxu1 %vm315_vm4, %v3767_v33  ;;  %v6238_v33 = vld [vmem:[%s7872_s1 + $0x90] sm:$0xff]  ;;  %v4557_v25 = vrot.slane %v4547_v17, %v7562_v8  ;;  %v4561_v29 = vrot.slane %v4548_v56, %v7562_v8 }
 0x1e1   : > { %6229 = vmatpush1.msk.msra.mxu1 %vm315_vm4, %v3766_v21  ;;  %v4553_v5 = vrot.slane %v4546_v3, %v7562_v8  ;;  %v4565_v21 = vrot.slane %v4549_v59, %v7562_v8  ;;  %v4378_v7 = vcombine.low %v4353_v24, %v4357_v38  ;;  %v6494_v38 = vld [vmem:[%s7873_s2] sm:$0xff] }
 0x1e2   : > { %v3973_v0 = vpop.permute.xlu0 %3972  ;;  %6230 = vmatmul.mubr.msk.f32.vlgmr.msra.gmra.mrb[0].mxu1 %vm346_vm15, %v6224_v61  ;;  %v4349_v61 = vrot.slane %v6985_v43, %v7562_v8 }
 0x1e3   : > { %4131 = vmatprep.mubr.f32.mxu1 %v6580_v16  ;;  %v4585_v28 = vcombine.low %v4553_v5, %v4557_v25  ;;  %v6252_v25 = vld [vmem:[%s7872_s1 + $0xa0] sm:$0xff] }
 0x1e4   : > { %v4377_v6 = vcombine.low %v4345_v41, %v4349_v61 }
 0x1e6   : > { %v3971_v50 = vpop.permute.xlu0 %3970 }
 0x1e7   : > { %v3981_v53 = vsel %vm3980_vm9, %v3971_v50, %v3973_v0 }
 0x1e9   : > { %v3975_v34 = vpop.permute.xlu1 %3974 }
 0x1ea   : > { %v3982_v23 = vsel %vm3980_vm9, %v3973_v0, %v3975_v34  ;;  %v3979_v54 = vpop.permute.xlu0 %3978 }
 0x1eb   : > { %6232 = vmatprep.subr.msk.mxu0 %vm315_vm4, %v3982_v23 }
 0x1ec   : > { %6233 = vmatpush1.msk.msra.mxu0 %vm315_vm4, %v3981_v53  ;;  %v4761_v53 = vrot.slane %v6836_v27, %v7562_v8  ;;  %v4765_v27 = vrot.slane %v6809_v60, %v7562_v8 }
 0x1ed   : > { %v3977_v49 = vpop.permute.xlu1 %3976  ;;  %6234 = vmatmul.mubr.msk.f32.vlgmr.msra.gmra.mrb[0].mxu0 %vm346_vm15, %v6231_v10  ;;  %6239 = vmatprep.subr.msk.mxu0 %vm315_vm4, %v4183_v51  ;;  %v4586_v51 = vcombine.low %v4561_v29, %v4565_v21  ;;  %v6496_v29 = vld [vmem:[%s7873_s2 + $0x10] sm:$0xff] }
 0x1ee   : > { %v3983_v48 = vsel %vm3980_vm9, %v3975_v34, %v3977_v49  ;;  %v3984_v45 = vsel %vm3980_vm9, %v3977_v49, %v3979_v54  ;;  %v4361_v37 = vpop.permute.xlu0 %4360  ;;  %6240 = vmatpush1.msk.msra.mxu0 %vm315_vm4, %v4177_v36  ;;  %4260 = vmatprep.mubr.f32.mxu0 %v6580_v16  ;;  %v6245_v49 = vld [vmem:[%s7872_s1 + $0x98] sm:$0xff]  ;;  %v4969_v21 = vrot.slane %v6496_v29, %v7562_v8 }
 0x1ef   : > { %6235 = vmatprep.subr.msk.mxu1 %vm315_vm4, %v3984_v45  ;;  %v4365_v47 = vrot.slane %v4361_v37, 4 }
 0x1f0   : > { %6236 = vmatpush1.msk.msra.mxu1 %vm315_vm4, %v3983_v48 }
 0x1f1   : > { %6237 = vmatmul.mubr.msk.f32.vlgmr.msra.gmra.mrb[0].mxu1 %vm346_vm15, %v6231_v10  ;;  %v4359_v9 = vpop.permute.xlu1 %4358  ;;  %6242 = vmatprep.subr.msk.mxu1 %vm315_vm4, %v4184_v42  ;;  %v4757_v10 = vrot.slane %v6832_v26, %v7562_v8 }
 0x1f2   : > { %v4364_v12 = vrot.slane %v4359_v9, 4  ;;  %v4567_v11 = vpop.permute.xlu0 %4566  ;;  %6243 = vmatpush1.msk.msra.mxu1 %vm315_vm4, %v4178_v31  ;;  %4331 = vmatprep.mubr.f32.mxu1 %v6580_v16 }
 0x1f3   : > { %v4572_v20 = vrot.slane %v4567_v11, 4  ;;  %v4789_v9 = vcombine.low %v4757_v10, %v4761_v53  ;;  %v5173_v10 = vrot.slane %v6714_v13, %v7562_v8  ;;  %v5177_v53 = vrot.slane %v6718_v14, %v7562_v8 }
 0x1f4   : > { %v4367_v4 = vsel %vm315_vm4, %v4364_v12, %v4365_v47  ;;  %v5367_v13 = vmul.f32 %v6819_v2, %v6728_v18  ;;  %v5368_v14 = vmul.f32 %v6780_v44, %v6731_v19 }
 0x1f5   : > { %v4368_v39 = vsel %vm341_vm14, %v4367_v4, %v4361_v37  ;;  %v4363_v43 = vpop.permute.xlu1 %4362  ;;  %6241 = vmatmul.mubr.msk.f32.vlgmr.msra.gmra.mrb[0].mxu0 %vm346_vm15, %v6238_v33  ;;  %v6495_v4 = vld [vmem:[%s7873_s2 + $0x8] sm:$0xff] }
 0x1f6   : > { %v4381_v30 = vmul.f32 %v4377_v6, %v4368_v39  ;;  %v4366_v35 = vrot.slane %v4363_v43, 4  ;;  %v4571_v0 = vpop.permute.xlu0 %4570  ;;  %4464 = vmatprep.mubr.f32.mxu0 %v6580_v16  ;;  %v4965_v5 = vrot.slane %v6495_v4, %v7562_v8 }
 0x1f7   : > { %v4574_v36 = vrot.slane %v4571_v0, 4 }
 0x1f8   : > { %v4369_v55 = vsel %vm315_vm4, %v4365_v47, %v4366_v35  ;;  %v4387_v32 = vcombine.high %v4381_v30, %v4381_v30  ;;  %v4769_v47 = vrot.slane %v6813_v62, %v7562_v8 }
 0x1f9   : > { %v4370_v50 = vsel %vm341_vm14, %v4369_v55, %v4363_v43  ;;  %6244 = vmatmul.mubr.msk.f32.vlgmr.msra.gmra.mrb[0].mxu1 %vm346_vm15, %v6238_v33  ;;  %v4569_v34 = vpop.permute.xlu1 %4568  ;;  %v4961_v33 = vrot.slane %v6494_v38, %v7562_v8 }
 0x1fa   : > { %v4382_v31 = vmul.f32 %v4378_v7, %v4370_v50  ;;  %v4573_v23 = vrot.slane %v4569_v34, 4  ;;  %6246 = vmatprep.subr.msk.mxu0 %vm315_vm4, %v4387_v32  ;;  %v4773_v54 = vpop.permute.xlu0 %4772  ;;  %4535 = vmatprep.mubr.f32.mxu1 %v6580_v16  ;;  %v4790_v62 = vcombine.low %v4765_v27, %v4769_v47 }
 0x1fb   : > { %6247 = vmatpush1.msk.msra.mxu0 %vm315_vm4, %v4381_v30  ;;  %v4777_v45 = vrot.slane %v4773_v54, 4  ;;  %v6497_v30 = vld [vmem:[%s7873_s2 + $0x18] sm:$0xff] }
 0x1fc   : > { %v4388_v41 = vcombine.high %v4382_v31, %v4382_v31  ;;  %v4575_v42 = vsel %vm315_vm4, %v4572_v20, %v4573_v23  ;;  %v4577_v48 = vsel %vm315_vm4, %v4573_v23, %v4574_v36  ;;  %v4973_v7 = vrot.slane %v6497_v30, %v7562_v8 }
 0x1fd   : > { %v4576_v37 = vsel %vm724_vm1, %v4575_v42, %v4569_v34  ;;  %v4578_v26 = vsel %vm724_vm1, %v4577_v48, %v4571_v0  ;;  %v4771_v61 = vpop.permute.xlu1 %4770  ;;  %6248 = vmatmul.mubr.msk.f32.vlgmr.msra.gmra.mrb[0].mxu0 %vm346_vm15, %v6245_v49  ;;  %v5165_v0 = vrot.slane %v6772_v40, %v7562_v8  ;;  %v5169_v20 = vrot.slane %v6784_v46, %v7562_v8 }
 0x1fe   : > { %v4589_v3 = vmul.f32 %v4585_v28, %v4576_v37  ;;  %v4776_v17 = vrot.slane %v4771_v61, 4  ;;  %6249 = vmatprep.subr.msk.mxu1 %vm315_vm4, %v4388_v41  ;;  %v4590_v56 = vmul.f32 %v4586_v51, %v4578_v26  ;;  %v4975_v59 = vpop.permute.xlu0 %4974  ;;  %4672 = vmatprep.mubr.f32.mxu0 %v6580_v16  ;;  %v4994_v40 = vcombine.low %v4969_v21, %v4973_v7 }
 0x1ff   : > { %6250 = vmatpush1.msk.msra.mxu1 %vm315_vm4, %v4382_v31  ;;  %v4980_v36 = vrot.slane %v4975_v59, 4  ;;  %v4993_v31 = vcombine.low %v4961_v33, %v4965_v5  ;;  %v5577_v30 = vrot.slane %v6721_v15, %v7562_v8 }
 0x200   : > { %v4595_v6 = vcombine.high %v4589_v3, %v4589_v3  ;;  %v4779_v12 = vsel %vm315_vm4, %v4776_v17, %v4777_v45  ;;  %v4596_v11 = vcombine.high %v4590_v56, %v4590_v56  ;;  %v5369_v17 = vmul.f32 %v6805_v57, %v6739_v22 }
 0x201   : > { %v4780_v60 = vsel %vm945_vm2, %v4779_v12, %v4773_v54  ;;  %6251 = vmatmul.mubr.msk.f32.vlgmr.msra.gmra.mrb[0].mxu1 %vm346_vm15, %v6245_v49  ;;  %v4775_v24 = vpop.permute.xlu1 %4774  ;;  %v5197_v54 = vcombine.low %v5165_v0, %v5169_v20  ;;  %v5366_v49 = vmul.f32 %v6816_v63, %v6721_v15  ;;  %v6266_v0 = vld [vmem:[%s7872_s1 + $0xb0] sm:$0xff] }
 0x202   : > { %v4793_v39 = vmul.f32 %v4789_v9, %v4780_v60  ;;  %v4778_v43 = vrot.slane %v4775_v24, 4  ;;  %6253 = vmatprep.subr.msk.mxu0 %vm315_vm4, %v4595_v6  ;;  %6256 = vmatprep.subr.msk.mxu1 %vm315_vm4, %v4596_v11  ;;  %v4979_v35 = vpop.permute.xlu0 %4978  ;;  %v5198_v6 = vcombine.low %v5173_v10, %v5177_v53  ;;  %v5377_v60 = vrot.slane %v5367_v13, %v7562_v8 }
 0x203   : > { %6254 = vmatpush1.msk.msra.mxu0 %vm315_vm4, %v4589_v3  ;;  %6257 = vmatpush1.msk.msra.mxu1 %vm315_vm4, %v4590_v56  ;;  %v4982_v50 = vrot.slane %v4979_v35, 4  ;;  %v6259_v3 = vld [vmem:[%s7872_s1 + $0xa8] sm:$0xff]  ;;  %v5373_v11 = vrot.slane %v5366_v49, %v7562_v8  ;;  %v5385_v38 = vrot.slane %v5369_v17, %v7562_v8  ;;  %v5785_v13 = vrot.slane %v7129_v1, %v7562_v8 }
 0x204   : > { %v4781_v55 = vsel %vm315_vm4, %v4777_v45, %v4778_v43  ;;  %v4799_v32 = vcombine.high %v4793_v39, %v4793_v39  ;;  %4743 = vmatprep.mubr.f32.mxu1 %v6580_v16 }
 0x205   : > { %v4782_v28 = vsel %vm945_vm2, %v4781_v55, %v4775_v24  ;;  %v4977_v34 = vpop.permute.xlu1 %4976  ;;  %6255 = vmatmul.mubr.msk.f32.vlgmr.msra.gmra.mrb[0].mxu0 %vm346_vm15, %v6252_v25  ;;  %v5381_v24 = vrot.slane %v5368_v14, %v7562_v8  ;;  %v5405_v29 = vcombine.low %v5373_v11, %v5377_v60  ;;  %v5581_v55 = vrot.slane %v6728_v18, %v7562_v8 }
 0x206   : > { %v4794_v51 = vmul.f32 %v4790_v62, %v4782_v28  ;;  %v4981_v23 = vrot.slane %v4977_v34, 4  ;;  %6260 = vmatprep.subr.msk.mxu0 %vm315_vm4, %v4799_v32  ;;  %4876 = vmatprep.mubr.f32.mxu0 %v6580_v16  ;;  %v5181_v46 = vpop.permute.xlu0 %5180  ;;  %v5589_v18 = vrot.slane %v6739_v22, %v7562_v8 }
 0x207   : > { %6261 = vmatpush1.msk.msra.mxu0 %vm315_vm4, %v4793_v39  ;;  %v5185_v45 = vrot.slane %v5181_v46, 4  ;;  %v5406_v20 = vcombine.low %v5381_v24, %v5385_v38  ;;  %v5609_v10 = vcombine.low %v5577_v30, %v5581_v55 }
 0x208   : > { %v4800_v41 = vcombine.high %v4794_v51, %v4794_v51  ;;  %v4983_v42 = vsel %vm315_vm4, %v4980_v36, %v4981_v23  ;;  %v4985_v48 = vsel %vm315_vm4, %v4981_v23, %v4982_v50  ;;  %v5585_v23 = vrot.slane %v6731_v19, %v7562_v8 }
 0x209   : > { %v4984_v37 = vsel %vm1162_vm3, %v4983_v42, %v4977_v34  ;;  %v4986_v26 = vsel %vm1162_vm3, %v4985_v48, %v4979_v35  ;;  %6258 = vmatmul.mubr.msk.f32.vlgmr.msra.gmra.mrb[0].mxu1 %vm346_vm15, %v6252_v25  ;;  %v5179_v61 = vpop.permute.xlu1 %5178 }
 0x20a   : > { %v4997_v63 = vmul.f32 %v4993_v31, %v4984_v37  ;;  %v4998_v27 = vmul.f32 %v4994_v40, %v4986_v26  ;;  %6263 = vmatprep.subr.msk.mxu1 %vm315_vm4, %v4800_v41  ;;  %v5184_v47 = vrot.slane %v5179_v61, 4  ;;  %4947 = vmatprep.mubr.f32.mxu1 %v6580_v16  ;;  %v5387_v9 = vpop.permute.xlu0 %5386  ;;  %v5610_v22 = vcombine.low %v5585_v23, %v5589_v18  ;;  %v6273_v37 = vld [vmem:[%s7872_s1 + $0xb8] sm:$0xff]  ;;  %v6015_v18 = vld [vmem:[%s7875_s4] sm:$0xff] }
 0x20b   : > { %6264 = vmatpush1.msk.msra.mxu1 %vm315_vm4, %v4794_v51  ;;  %v5392_v39 = vrot.slane %v5387_v9, 4  ;;  %v5781_v61 = vrot.slane %v7125_v52, %v7562_v8  ;;  %v6595_v23 = vmov 0  }
 0x20c   : > { %v5003_v2 = vcombine.high %v4997_v63, %v4997_v63  ;;  %v5004_v56 = vcombine.high %v4998_v27, %v4998_v27  ;;  %v5187_v44 = vsel %vm315_vm4, %v5184_v47, %v5185_v45  ;;  %6485 = vset.pattern.permute.xlu0 %v6595_v23  ;;  %6486 = vset.pattern.permute.xlu1 %v6595_v23 }
 0x20d   : > { %v5188_v59 = vsel %vm1383_vm5, %v5187_v44, %v5181_v46  ;;  %6262 = vmatmul.mubr.msk.f32.vlgmr.msra.gmra.mrb[0].mxu0 %vm346_vm15, %v6259_v3  ;;  %v5183_v12 = vpop.permute.xlu1 %5182  ;;  %v5813_v44 = vcombine.low %v5781_v61, %v5785_v13 }
 0x20e   : > { %v5201_v62 = vmul.f32 %v5197_v54, %v5188_v59  ;;  %6267 = vmatprep.subr.msk.mxu0 %vm315_vm4, %v5003_v2  ;;  %v5186_v57 = vrot.slane %v5183_v12, 4  ;;  %6270 = vmatprep.subr.msk.mxu1 %vm315_vm4, %v5004_v56  ;;  %v5391_v33 = vpop.permute.xlu0 %5390 }
 0x20f   : > { %6268 = vmatpush1.msk.msra.mxu0 %vm315_vm4, %v4997_v63  ;;  %5080 = vmatprep.mubr.f32.mxu0 %v6580_v16  ;;  %v5394_v43 = vrot.slane %v5391_v33, 4  ;;  %v5789_v63 = vrot.slane %v7167_v58, %v7562_v8 }
 0x210   : > { %v5207_v4 = vcombine.high %v5201_v62, %v5201_v62  ;;  %v5189_v5 = vsel %vm315_vm4, %v5185_v45, %v5186_v57  ;;  %v6280_v57 = vld [vmem:[%s7872_s1 + $0xc0] sm:$0xff] }
 0x211   : > { %v5190_v25 = vsel %vm1383_vm5, %v5189_v5, %v5183_v12  ;;  %6265 = vmatmul.mubr.msk.f32.vlgmr.msra.gmra.mrb[0].mxu1 %vm346_vm15, %v6259_v3  ;;  %v5389_v21 = vpop.permute.xlu1 %5388  ;;  %v6294_v5 = vld [vmem:[%s7872_s1 + $0xd0] sm:$0xff] }
 0x212   : > { %v5202_v7 = vmul.f32 %v5198_v6, %v5190_v25  ;;  %6271 = vmatpush1.msk.msra.mxu1 %vm315_vm4, %v4998_v27  ;;  %v5393_v35 = vrot.slane %v5389_v21, 4  ;;  %6274 = vmatprep.subr.msk.mxu0 %vm315_vm4, %v5207_v4  ;;  %v5593_v36 = vpop.permute.xlu0 %5592  ;;  %v7881_v27 = vld [vmem:[#allocation5_spill] sm:$0xff]  ;;  %v6287_v4 = vld [vmem:[%s7872_s1 + $0xc8] sm:$0xff] }
 0x213   : > { %5151 = vmatprep.mubr.f32.mxu1 %v6580_v16  ;;  %v5597_v28 = vrot.slane %v5593_v36, 4  ;;  %v5793_v47 = vrot.slane %v7881_v27, %v7562_v8 }
 0x214   : > { %v5208_v32 = vcombine.high %v5202_v7, %v5202_v7  ;;  %v5395_v15 = vsel %vm315_vm4, %v5392_v39, %v5393_v35  ;;  %v5397_v50 = vsel %vm315_vm4, %v5393_v35, %v5394_v43 }
 0x215   : > { %v5396_v34 = vsel %vm1616_vm6, %v5395_v15, %v5389_v21  ;;  %6269 = vmatmul.mubr.msk.f32.vlgmr.msra.gmra.mrb[0].mxu0 %vm346_vm15, %v6266_v0  ;;  %v5398_v51 = vsel %vm1616_vm6, %v5397_v50, %v5391_v33  ;;  %v5591_v31 = vpop.permute.xlu1 %5590  ;;  %v5814_v8 = vcombine.low %v5789_v63, %v5793_v47 }
 0x216   : > { %v5409_v40 = vmul.f32 %v5405_v29, %v5396_v34  ;;  %6275 = vmatpush1.msk.msra.mxu0 %vm315_vm4, %v5201_v62  ;;  %v5410_v46 = vmul.f32 %v5406_v20, %v5398_v51  ;;  %6277 = vmatprep.subr.msk.mxu1 %vm315_vm4, %v5208_v32  ;;  %v5596_v54 = vrot.slane %v5591_v31, 4  ;;  %v5795_v53 = vpop.permute.xlu0 %5794 }
 0x217   : > { %5284 = vmatprep.mubr.f32.mxu0 %v6580_v16  ;;  %v5800_v17 = vrot.slane %v5795_v53, 4 }
 0x218   : > { %v5415_v49 = vcombine.high %v5409_v40, %v5409_v40  ;;  %v5416_v41 = vcombine.high %v5410_v46, %v5410_v46  ;;  %v5599_v42 = vsel %vm315_vm4, %v5596_v54, %v5597_v28 }
 0x219   : > { %6272 = vmatmul.mubr.msk.f32.vlgmr.msra.gmra.mrb[0].mxu1 %vm346_vm15, %v6266_v0  ;;  %v5600_v19 = vsel %vm1833_vm7, %v5599_v42, %v5593_v36  ;;  %v5595_v48 = vpop.permute.xlu1 %5594 }
 0x21a   : > { %6278 = vmatpush1.msk.msra.mxu1 %vm315_vm4, %v5202_v7  ;;  %v5613_v45 = vmul.f32 %v5609_v10, %v5600_v19  ;;  %6281 = vmatprep.subr.msk.mxu0 %vm315_vm4, %v5415_v49  ;;  %v5598_v26 = vrot.slane %v5595_v48, 4  ;;  %v5799_v14 = vpop.permute.xlu0 %5798  ;;  %v6004_v10 = vld [vmem:[%s7874_s3] sm:$0xff] }
 0x21b   : > { %5355 = vmatprep.mubr.f32.mxu1 %v6580_v16  ;;  %6284 = vmatprep.subr.msk.mxu1 %vm315_vm4, %v5416_v41  ;;  %v5802_v2 = vrot.slane %v5799_v14, 4 }
 0x21c   : > { %v5619_v3 = vcombine.high %v5613_v45, %v5613_v45  ;;  %v5601_v9 = vsel %vm315_vm4, %v5597_v28, %v5598_v26 }
 0x21d   : > { %6276 = vmatmul.mubr.msk.f32.vlgmr.msra.gmra.mrb[0].mxu0 %vm346_vm15, %v6273_v37  ;;  %v5602_v52 = vsel %vm1833_vm7, %v5601_v9, %v5595_v48  ;;  %v5797_v1 = vpop.permute.xlu1 %5796 }
 0x21e   : > { %6282 = vmatpush1.msk.msra.mxu0 %vm315_vm4, %v5409_v40  ;;  %v5614_v56 = vmul.f32 %v5610_v22, %v5602_v52  ;;  %5492 = vmatprep.mubr.f32.mxu0 %v6580_v16  ;;  %v5801_v58 = vrot.slane %v5797_v1, 4 }
 0x21f   : > { %6288 = vmatprep.subr.msk.mxu0 %vm315_vm4, %v5619_v3 }
 0x220   : > { %v5620_v59 = vcombine.high %v5614_v56, %v5614_v56  ;;  %v5803_v6 = vsel %vm315_vm4, %v5800_v17, %v5801_v58  ;;  %v5805_v12 = vsel %vm315_vm4, %v5801_v58, %v5802_v2 }
 0x221   : > { %6279 = vmatmul.mubr.msk.f32.vlgmr.msra.gmra.mrb[0].mxu1 %vm346_vm15, %v6273_v37  ;;  %v5804_v11 = vsel %vm2054_vm10, %v5803_v6, %v5797_v1  ;;  %v5806_v60 = vsel %vm2054_vm10, %v5805_v12, %v5799_v14 }
 0x222   : > { %6285 = vmatpush1.msk.msra.mxu1 %vm315_vm4, %v5410_v46  ;;  %v5817_v62 = vmul.f32 %v5813_v44, %v5804_v11  ;;  %5563 = vmatprep.mubr.f32.mxu1 %v6580_v16  ;;  %v5818_v24 = vmul.f32 %v5814_v8, %v5806_v60 }
 0x223   : > { %6291 = vmatprep.subr.msk.mxu1 %vm315_vm4, %v5620_v59 }
 0x224   : > { %v5823_v38 = vcombine.high %v5817_v62, %v5817_v62  ;;  %v5824_v33 = vcombine.high %v5818_v24, %v5818_v24 }
 0x225   : > { %6283 = vmatmul.mubr.msk.f32.vlgmr.msra.gmra.mrb[0].mxu0 %vm346_vm15, %v6280_v57 }
 0x226   : > { %6289 = vmatpush1.msk.msra.mxu0 %vm315_vm4, %v5613_v45  ;;  %5696 = vmatprep.mubr.f32.mxu0 %v6580_v16 }
 0x227   : > { %6295 = vmatprep.subr.msk.mxu0 %vm315_vm4, %v5823_v38 }
 0x229   : > { %6286 = vmatmul.mubr.msk.f32.vlgmr.msra.gmra.mrb[0].mxu1 %vm346_vm15, %v6280_v57 }
 0x22a   : > { %6292 = vmatpush1.msk.msra.mxu1 %vm315_vm4, %v5614_v56  ;;  %5767 = vmatprep.mubr.f32.mxu1 %v6580_v16 }
 0x22b   : > { %6298 = vmatprep.subr.msk.mxu1 %vm315_vm4, %v5824_v33 }
 0x22d   : > { %6290 = vmatmul.mubr.msk.f32.vlgmr.msra.gmra.mrb[0].mxu0 %vm346_vm15, %v6287_v4 }
 0x22e   : > { %6296 = vmatpush1.msk.msra.mxu0 %vm315_vm4, %v5817_v62  ;;  %5900 = vmatprep.mubr.f32.mxu0 %v6580_v16 }
 0x231   : > { %6293 = vmatmul.mubr.msk.f32.vlgmr.msra.gmra.mrb[0].mxu1 %vm346_vm15, %v6287_v4 }
 0x232   : > { %6299 = vmatpush1.msk.msra.mxu1 %vm315_vm4, %v5818_v24  ;;  %5971 = vmatprep.mubr.f32.mxu1 %v6580_v16 }
 0x235   : > { %6297 = vmatmul.mubr.msk.f32.vlgmr.msra.gmra.mrb[0].mxu0 %vm346_vm15, %v6294_v5 }
 0x239   : > { %6300 = vmatmul.mubr.msk.f32.vlgmr.msra.gmra.mrb[0].mxu1 %vm346_vm15, %v6294_v5 }
 0x308   : > { %v5902_v39 = vpop.f32.mrb[0].mxu0 }
 0x309   : > { %v5904_v43 = vpop.f32.mrb[1].mxu0 }
 0x30a   : > { %v5982_v25 = vadd.f32 %v5904_v43, %v5902_v39 }
 0x30c   : > { %v5973_v29 = vpop.f32.mrb[0].mxu1 }
 0x30d   : > { %v5983_v21 = vadd.f32 %v5982_v25, %v5973_v29  ;;  %v5975_v30 = vpop.f32.mrb[1].mxu1 }
 0x30f   : > { %v5984_v7 = vadd.f32 %v5983_v21, %v5975_v30 }
 0x311   : > { %5985 = vadd.xlane.f32.xlu1 %v5984_v7 }
 0x322   : > { %6018 = vperm.xlu1 %6486, %v6015_v18  }
 0x39e   : > { %v5986_v35 = vpop.xlane.xlu1 %5985 }
 0x39f   : > { %v5987_v0 = vmul.f32 0.001953125, %v5986_v35 }
 0x3a1   : > { %v5988_v20 = vsub.f32 %v5902_v39, %v5987_v0  ;;  %v5989_v55 = vsub.f32 %v5904_v43, %v5987_v0  ;;  %v5990_v36 = vsub.f32 %v5973_v29, %v5987_v0  ;;  %v5991_v32 = vsub.f32 %v5975_v30, %v5987_v0 }
 0x3a2   : > { %v6019_v42 = vpop.permute.xlu1 %6018 }
 0x3a3   : > { %v5992_v15 = vmul.f32 %v5988_v20, %v5988_v20  ;;  %v5993_v16 = vmul.f32 %v5989_v55, %v5989_v55  ;;  %v5994_v50 = vmul.f32 %v5990_v36, %v5990_v36  ;;  %v5995_v34 = vmul.f32 %v5991_v32, %v5991_v32 }
 0x3a5   : > { %v5996_v28 = vadd.f32 %v5993_v16, %v5992_v15 }
 0x3a7   : > { %v5997_v51 = vadd.f32 %v5996_v28, %v5994_v50 }
 0x3a9   : > { %v5998_v31 = vadd.f32 %v5997_v51, %v5995_v34 }
 0x3ab   : > { %5999 = vadd.xlane.f32.xlu0 %v5998_v31 }
 0x438   : > { %v6000_v40 = vpop.xlane.xlu0 %5999 }
 0x439   : > { %v6001_v46 = vmul.f32 0.001953125, %v6000_v40 }
 0x43b   : > { %v6002_v54 = vadd.f32 1e-05, %v6001_v46 }
 0x43d   : > { %6489 = vrsqrt.f32 %v6002_v54 }
 0x447   : > { %v6490_v53 = vpop.eup %6489 }
 0x448   : > { %v6005_v49 = vmul.f32 %v6490_v53, %v6004_v10 }
 0x44a   : > { %6008 = vperm.xlu0 %6485, %v6005_v49  }
 0x4c9   : > { %v6009_v41 = vpop.permute.xlu0 %6008 }
 0x4ca   : > { %v6011_v19 = vmul.f32 %v6009_v41, %v5988_v20  ;;  %v6012_v22 = vmul.f32 %v6009_v41, %v5989_v55  ;;  %v6013_v48 = vmul.f32 %v6009_v41, %v5990_v36  ;;  %v6014_v45 = vmul.f32 %v6009_v41, %v5991_v32 }
 0x4cc   : > { %v6021_v37 = vadd.f32 %v6019_v42, %v6011_v19  ;;  %v6022_v26 = vadd.f32 %v6019_v42, %v6012_v22  ;;  %v6023_v61 = vadd.f32 %v6019_v42, %v6013_v48  ;;  %v6024_v13 = vadd.f32 %v6019_v42, %v6014_v45 }
 0x4ce   : > { %v6025_v14 = vmax.f32 %v6021_v37, 0.0  ;;  %v6026_v63 = vmax.f32 %v6022_v26, 0.0  ;;  %v6027_v27 = vmax.f32 %v6023_v61, 0.0  ;;  %v6028_v47 = vmax.f32 %v6024_v13, 0.0 }
 0x4d0   : > { %6029 = vst [vmem:[%s217_s30] sm:$0xff] %v6025_v14  ;;  %6030 = vst [vmem:[%s217_s30 + $0x8] sm:$0xff] %v6026_v63 }
 0x4d1   : > { %6031 = vst [vmem:[%s217_s30 + $0x10] sm:$0xff] %v6027_v27  ;;  %6032 = vst [vmem:[%s217_s30 + $0x18] sm:$0xff] %v6028_v47 }
 0x4d2   : > { %6511 = shalt.err (!%p6508_p3)
}
 0x4d3   : > { %s6512_s7 = scalar_lea.hbm %s7829_s13, 512  ;;  %s6516_s12 = scalar_lea.hbm %s7876_s5, 1024 }
 0x4d4   : > { %p6513_p4 = scmp.ne.s32.totalorder %s7829_s13, %s6512_s7  ;;  %p6517_p9 = scmp.lt.u32.totalorder %s7829_s13, %s7876_s5 }
 0x4d5   : > { %p6518_p10 = scmp.lt.u32.totalorder %s6516_s12, %s6512_s7  ;;  %p6520_p12 = scmp.lt.u32.totalorder %s6512_s7, %s7829_s13 }
 0x4d6   : > { %p6514_p7 = pnand %p6513_p4, %p6665_p5 }
 0x4d7   : > { %p6519_p11 = por %p6518_p10, %p6517_p9 }
 0x4d8   : > { %p6515_p8 = pneg %p6514_p7 }
 0x4d9   : > { %p6521_p13 = por %p6520_p12, %p6519_p11 }
 0x4db   : > { %p6522_p0 = pnand %p6521_p13, %p6515_p8 }
 0x4dd   : > { %6525 = shalt.err (!%p6522_p0)
}
 0x4de   : > { %6412 = dma.vmem_to_hbm [thread:$0]  (%p6665_p5), %s7831_s14, 512, %s7829_s13, %s6034_s22  }
 0x4df PF: > { %p6418_p1 = scmp.ge.s32.totalorder %s6560_s21, 2  ;;  %s6060_s11 = sand.u32 1, %s6548_s18  }
 0x4e0   : > { %s6061_s30 = scalar_lea.sflag [#allocation3], %s6060_s11 }
 0x4e1   : > { %p6415_p2 = pnand %p6418_p1, %p6669_p6 }
 0x4e3   : > { %6543 = dma.done.wait (!%p6415_p2), %s6061_s30, 512  }
 0x4e4   : > { %6545 = vsyncadd (!%p6415_p2), %s6061_s30, 4294966784  ;;  %p15_p3 = scmp.ge.s32.totalorder %s6652_s24, 4   ;;  %s7882_s18 = smov %s6552_s19 }
 0x4e5   : > { %s7883_s19 = smov %s6556_s20  ;;  %s7884_s20 = smov %s6663_s27 }
 0x4e6   : > { %s7885_s21 = smov %s6652_s24  ;;  %17 = sbr.rel (!%p15_p3) target bundleno = 3 (0x3), region = 101 }
 0x4ed   :  { %6066 = vsyncpa [#allocation3], 1 }
 0x4ee   :  { %6068 = vsyncpa [#allocation3 + $0x1], 1 }

</bundles_post_ra>
